<compile_context>
chip_gen: v5e
topology: v5e:2x2
jax: 0.10.0
libtpu: 0.0.40
codegen_flags: <defaults>
</compile_context>

<pallas_src>
import functools

import numpy as np
import jax
import jax.numpy as jnp
from jax.experimental import pallas as pl
from jax.experimental.pallas import tpu as pltpu


def _round_up(x, m):
    return (x + m - 1) // m * m


# ---------------------------------------------------------------------------
# Kernel 1: Conv2d(4x4, s=1, p=1, no bias) + InstanceNorm2d + LeakyReLU(0.2)
# ---------------------------------------------------------------------------
def _conv_in_lrelu_kernel(x_ref, w_ref, mask_ref, y_ref, acc_ref, *,
                          group_offsets, n_valid):
    # x_ref:   (cin_t, Lp)             bf16  zero-padded input, rows flattened at stride Ws
    # w_ref:   (n_groups, cout_t, gk)  bf16  conv weights (tap groups along axis 0)
    # mask_ref:(1, N)                  f32   0/1 mask of valid conv positions (strided layout)
    # y_ref:   (cout_t, N)             bf16  normalized + activated conv output, N = Hc8*Ws
    # acc_ref: (cout_t, N)             f32   accumulator across the Cin grid axis
    k = pl.program_id(2)
    n_cols = acc_ref.shape[1]

    @pl.when(k == 0)
    def _init():
        acc_ref[...] = jnp.zeros_like(acc_ref)

    part = None
    for gi, offs in enumerate(group_offsets):
        if len(offs) == 1:
            xg = x_ref[:, pl.ds(offs[0], n_cols)]
        else:
            # pack several kx taps into one matmul (K = len(offs) * cin_t)
            xg = jnp.concatenate([x_ref[:, pl.ds(o, n_cols)] for o in offs], axis=0)
        d = jnp.dot(w_ref[gi], xg, preferred_element_type=jnp.float32)
        part = d if part is None else part + d
    acc_ref[...] += part

    @pl.when(k == pl.num_programs(2) - 1)
    def _finalize():
        acc = acc_ref[...]
        mask = mask_ref[...]                       # junk columns/rows excluded from stats
        accm = acc * mask
        inv_n = 1.0 / float(n_valid)
        s1 = jnp.sum(accm, axis=1, keepdims=True)
        s2 = jnp.sum(accm * accm, axis=1, keepdims=True)
        mean = s1 * inv_n
        var = s2 * inv_n - mean * mean             # biased variance (InstanceNorm2d, eps=1e-5)
        y = (acc - mean) * jax.lax.rsqrt(var + 1e-5)
        y = jnp.where(y >= 0.0, y, 0.2 * y)        # LeakyReLU(0.2)
        y_ref[...] = y.astype(y_ref.dtype)


# ---------------------------------------------------------------------------
# Kernel 2: BlurPool(stride=2) = reflect-pad([1,2,1,2]) + depthwise 4x4 blur + stride-2,
#           applied separably: one big-M width matmul + per-channel height matmuls.
# ---------------------------------------------------------------------------
def _blurpool_kernel(y_ref, awt_ref, ah_ref, o_ref, z_ref, *, hc8, ho):
    # y_ref:  (ct*hc8, ws) bf16   activations, rows fused as [channel, conv-row]
    # awt_ref:(ws, wo)     bf16   width-axis  pad+blur+stride-2 operator (zero rows kill junk cols)
    # ah_ref: (ho, hc8)    bf16   height-axis pad+blur+stride-2 operator (zero cols kill junk rows)
    # o_ref:  (ct*ho, wo)  f32    blurred output, rows fused as [channel, out-row]
    # z_ref:  (ct*hc8, wo) bf16   scratch: width-blurred activations
    ct = y_ref.shape[0] // hc8

    # Width blur: single large-M matmul (channels and conv rows fused on M), operator shared.
    z_ref[...] = jnp.dot(y_ref[...], awt_ref[...],
                         preferred_element_type=jnp.float32).astype(z_ref.dtype)
    ah = ah_ref[...]

    # Height blur contracts over conv rows (fused with channels), so it is per-channel.
    def body(c, carry):
        r0 = pl.multiple_of(c * hc8, 8)
        zc = z_ref[pl.ds(r0, hc8), :]                                 # (hc8, wo)
        oc = jnp.dot(ah, zc, preferred_element_type=jnp.float32)      # (ho, wo)
        o0 = c * ho
        if ho % 8 == 0:
            o0 = pl.multiple_of(o0, 8)
        o_ref[pl.ds(o0, ho), :] = oc.astype(o_ref.dtype)
        return carry

    jax.lax.fori_loop(0, ct, body, 0)


def _blur_axis_operator(L, a):
    """ReflectionPad(1,2) + 1-D blur `a` + stride-2 subsample as a dense (Lo, L) operator."""
    Lp = L + 3
    Lo = (Lp - 4) // 2 + 1
    idx = np.array([1] + list(range(L)) + [L - 2, L - 3])
    P = np.zeros((Lp, L), dtype=np.float32)
    P[np.arange(Lp), idx] = 1.0
    S = np.zeros((Lo, Lp), dtype=np.float32)
    for i in range(Lo):
        S[i, 2 * i:2 * i + 4] = a
    return S @ P, Lo


def _largest_tile(total, max_tile):
    if total <= max_tile:
        return total
    for t in range(max_tile, 0, -1):
        if total % t == 0 and t % 8 == 0:
            return t
    return total


def _vmem_limit_bytes():
    cap = None
    try:
        cap = int(pltpu.get_tpu_info().vmem_capacity_bytes)
    except Exception:
        cap = None
    if not cap:
        kind = jax.devices()[0].device_kind.lower()
        cap = 64 * 2**20 if ("v7" in kind or "tpu7" in kind) else 128 * 2**20
    # leave headroom for Mosaic internal scratch (~48 MiB on v7x, ~100 MiB on v5e/v6e)
    return int(min(cap - 16 * 2**20, 100 * 2**20))


def unet_down_pallas(x, w_conv, *, cout_tile=None, cin_tile=None):
    """UNetDown forward. x: (B, Cin, H, W) f32, w_conv: (Cout, Cin, 4, 4) f32."""
    B, Cin, H, W = x.shape
    Cout = w_conv.shape[0]
    assert w_conv.shape == (Cout, Cin, 4, 4)

    Hc, Wc = H - 1, W - 1                  # conv output spatial (k=4, s=1, p=1)
    Hc8 = _round_up(Hc, 8)                 # conv rows padded to a sublane multiple
    Ws = W + 2                             # row stride of flat padded input / conv accumulator
    Hs = Hc8 + 4                           # rows of flat padded input (>= H + 2, covers all taps)
    Lp = Hs * Ws
    N = Hc8 * Ws                           # columns of the conv accumulator
    Ho = (Hc - 1) // 2 + 1                 # BlurPool output spatial
    Wo = (Wc - 1) // 2 + 1

    if cout_tile is None:
        cout_tile = _largest_tile(Cout, 256)
    assert Cout % cout_tile == 0
    n_ct = Cout // cout_tile

    if cin_tile is None:
        cin_tile = Cin if Cin <= 256 else (256 if Cin % 256 == 0 else
                                           (128 if Cin % 128 == 0 else Cin))
    assert Cin % cin_tile == 0
    assert cin_tile == Cin or cin_tile % 128 == 0
    n_k = Cin // cin_tile

    # ---- glue: zero-padded input, flattened with row stride Ws (NO im2col) ----
    xp = jnp.pad(x, ((0, 0), (0, 0), (1, Hs - H - 1), (1, Ws - W - 1)))
    xf = xp.reshape(B, Cin, Lp).astype(jnp.bfloat16)

    # ---- glue: conv weights grouped per tap; pack the 4 kx taps per ky when possible ----
    pack_kx = (n_k == 1) and (Cin % 8 == 0)
    if pack_kx:
        # (ky, Cout, [kx, cin]): 4 matmuls of K = 4*Cin
        w_arr = jnp.transpose(w_conv, (2, 0, 3, 1)).reshape(4, Cout, 4 * Cin).astype(jnp.bfloat16)
        group_offsets = tuple(tuple(ky * Ws + kx for kx in range(4)) for ky in range(4))
        n_groups, gk = 4, 4 * Cin
    else:
        # (ky*4+kx, Cout, Cin): 16 matmuls of K = cin_tile (Cin optionally grid-tiled)
        w_arr = jnp.transpose(w_conv, (2, 3, 0, 1)).reshape(16, Cout, Cin).astype(jnp.bfloat16)
        group_offsets = tuple((ky * Ws + kx,) for ky in range(4) for kx in range(4))
        n_groups, gk = 16, cin_tile

    # ---- glue: 0/1 mask of valid conv positions in the strided accumulator layout ----
    cols = np.arange(N)
    mask_np = (((cols % Ws) < Wc) & ((cols // Ws) < Hc)).astype(np.float32)
    mask = jnp.asarray(mask_np.reshape(1, N))

    # ---- glue: separable BlurPool operators (reflect pad + [1,3,3,1]/8 per axis + stride 2) ----
    a = np.array([1.0, 3.0, 3.0, 1.0], dtype=np.float32) / 8.0
    Ah, Ho_ = _blur_axis_operator(Hc, a)                    # (Ho, Hc)
    Aw, Wo_ = _blur_axis_operator(Wc, a)                    # (Wo, Wc)
    assert (Ho_, Wo_) == (Ho, Wo)
    awt_np = np.zeros((Ws, Wo), np.float32)
    awt_np[:Wc, :] = Aw.T                                   # zero rows kill junk columns
    ah_np = np.zeros((Ho, Hc8), np.float32)
    ah_np[:, :Hc] = Ah                                      # zero cols kill junk rows
    awt = jnp.asarray(awt_np, dtype=jnp.bfloat16)           # exact in bf16 (pow-2 denominators)
    ah8 = jnp.asarray(ah_np, dtype=jnp.bfloat16)

    vmem_limit = _vmem_limit_bytes()
    # v7x megacore: split on the batch axis when B > 1 so each TC gets a disjoint input slab.
    dims1 = ("parallel", "arbitrary", "arbitrary") if B > 1 else ("parallel", "parallel", "arbitrary")

    conv_flops = 2 * B * Cout * Cin * 16 * Hc * Wc
    conv_bytes = B * n_ct * Cin * Lp * 2 + B * 16 * Cout * Cin * 2 + B * Cout * N * 2

    # ---- kernel 1: conv + instance norm + leaky relu ----
    y = pl.pallas_call(
        functools.partial(_conv_in_lrelu_kernel,
                          group_offsets=group_offsets, n_valid=Hc * Wc),
        out_shape=jax.ShapeDtypeStruct((B, Cout, N), jnp.bfloat16),
        grid_spec=pltpu.PrefetchScalarGridSpec(
            num_scalar_prefetch=0,
            grid=(B, n_ct, n_k),
            in_specs=[
                pl.BlockSpec((None, cin_tile, Lp), lambda b, c, k: (b, k, 0)),
                pl.BlockSpec((n_groups, cout_tile, gk), lambda b, c, k: (0, c, k)),
                pl.BlockSpec((1, N), lambda b, c, k: (0, 0)),
            ],
            out_specs=pl.BlockSpec((None, cout_tile, N), lambda b, c, k: (b, c, 0)),
            scratch_shapes=[pltpu.VMEM((cout_tile, N), jnp.float32)],
        ),
        compiler_params=pltpu.CompilerParams(
            dimension_semantics=dims1,
            vmem_limit_bytes=vmem_limit),
        cost_estimate=pl.CostEstimate(flops=conv_flops, transcendentals=0,
                                      bytes_accessed=conv_bytes),
    )(xf, w_arr, mask)

    # Free row-major relabeling: (B, Cout, Hc8*Ws) -> (B, Cout*Hc8, Ws).
    y2 = y.reshape(B, Cout * Hc8, Ws)

    # ---- kernel 2: separable BlurPool ----
    out2 = pl.pallas_call(
        functools.partial(_blurpool_kernel, hc8=Hc8, ho=Ho),
        out_shape=jax.ShapeDtypeStruct((B, Cout * Ho, Wo), x.dtype),
        grid_spec=pltpu.PrefetchScalarGridSpec(
            num_scalar_prefetch=0,
            grid=(B, n_ct),
            in_specs=[
                pl.BlockSpec((None, cout_tile * Hc8, Ws), lambda b, c: (b, c, 0)),
                pl.BlockSpec((Ws, Wo), lambda b, c: (0, 0)),
                pl.BlockSpec((Ho, Hc8), lambda b, c: (0, 0)),
            ],
            out_specs=pl.BlockSpec((None, cout_tile * Ho, Wo), lambda b, c: (b, c, 0)),
            scratch_shapes=[pltpu.VMEM((cout_tile * Hc8, Wo), jnp.bfloat16)],
        ),
        compiler_params=pltpu.CompilerParams(
            dimension_semantics=("parallel", "parallel"),
            vmem_limit_bytes=vmem_limit),
    )(y2, awt, ah8)

    return out2.reshape(B, Cout, Ho, Wo)


def unet_down_reference(x, w_conv):
    """Pure-JAX reference of the PyTorch forward (for validation)."""
    Cout = w_conv.shape[0]
    y = jax.lax.conv_general_dilated(
        x, w_conv, window_strides=(1, 1), padding=((1, 1), (1, 1)),
        dimension_numbers=("NCHW", "OIHW", "NCHW"))
    mean = y.mean(axis=(2, 3), keepdims=True)
    var = ((y - mean) ** 2).mean(axis=(2, 3), keepdims=True)
    y = (y - mean) / jnp.sqrt(var + 1e-5)
    y = jnp.where(y >= 0, y, 0.2 * y)
    y = jnp.pad(y, ((0, 0), (0, 0), (1, 2), (1, 2)), mode="reflect")
    a = jnp.array([1.0, 3.0, 3.0, 1.0], dtype=x.dtype)
    filt = jnp.broadcast_to(jnp.outer(a, a) / 64.0, (Cout, 1, 4, 4))
    return jax.lax.conv_general_dilated(
        y, filt, window_strides=(2, 2), padding="VALID",
        dimension_numbers=("NCHW", "OIHW", "NCHW"), feature_group_count=Cout)


if __name__ == "__main__":
    B, Cin, Cout, H, W = 2, 4, 8, 16, 16
    key = jax.random.PRNGKey(0)
    kx_, kw_ = jax.random.split(key)
    x = jax.random.normal(kx_, (B, Cin, H, W), dtype=jnp.float32)
    # Conv2d(in_size, out_size, 4, 1, 1, bias=False)-shaped deterministic weights.
    bound = 1.0 / np.sqrt(Cin * 4 * 4)
    w_conv = jax.random.uniform(kw_, (Cout, Cin, 4, 4), dtype=jnp.float32,
                                minval=-bound, maxval=bound)

    out = jax.block_until_ready(unet_down_pallas(x, w_conv))
    ref = jax.block_until_ready(unet_down_reference(x, w_conv))

    assert out.shape == ref.shape == (B, Cout, 8, 8), out.shape
    max_err = float(jnp.max(jnp.abs(out - ref)))
    assert max_err < 5e-2, f"max abs error too large: {max_err}"

    print("KERNEL_OK")
</pallas_src>

<mosaic_0001>
module attributes {stable_mosaic.version = 11 : i64} {
  func.func @_conv_in_lrelu_kernel(%arg0: i32, %arg1: i32, %arg2: i32, %arg3: memref<1x4x360xbf16, #tpu.memory_space<vmem>>, %arg4: memref<16x8x4xbf16, #tpu.memory_space<vmem>>, %arg5: memref<1x288xf32, #tpu.memory_space<vmem>>, %arg6: memref<1x8x288xbf16, #tpu.memory_space<vmem>>, %arg7: memref<8x288xf32, #tpu.memory_space<vmem>>) attributes {dimension_semantics = [#tpu.dimension_semantics<parallel>, #tpu.dimension_semantics<arbitrary>, #tpu.dimension_semantics<arbitrary>], iteration_bounds = array<i64: 2, 1, 1>, scalar_prefetch = 0 : i64, scratch_operands = 1 : i64, tpu.core_type = #tpu.core_type<tc>, window_params = [{transform_indices = @transform_0, window_bounds = array<i64: 1, 4, 360>}, {transform_indices = @transform_1, window_bounds = array<i64: 16, 8, 4>}, {pipeline_mode = #tpu.pipeline_mode<synchronous>, transform_indices = @transform_2, window_bounds = array<i64: 1, 288>}, {transform_indices = @transform_3, window_bounds = array<i64: 1, 8, 288>}]} {
    %c0_i32 = arith.constant 0 : i32
    %0 = arith.cmpi eq, %arg2, %c0_i32 : i32
    %1 = arith.extui %0 : i1 to i32
    %c0_i32_0 = arith.constant 0 : i32
    %2 = arith.cmpi ne, %1, %c0_i32_0 : i32
    scf.if %2 {
      %cst_90 = arith.constant 0.000000e+00 : f32
      %104 = vector.broadcast %cst_90 : f32 to vector<8x288xf32>
      %c0_91 = arith.constant 0 : index
      %c0_92 = arith.constant 0 : index
      %105 = vector.load %arg7[%c0_91, %c0_92] : memref<8x288xf32, #tpu.memory_space<vmem>>, vector<8x288xf32>
      tpu.vector_store %arg7[%c0_91, %c0_92], %104 {strides = array<i32>} : memref<8x288xf32, #tpu.memory_space<vmem>>, vector<8x288xf32>,
    } else {
    }
    %c0 = arith.constant 0 : index
    %c0_1 = arith.constant 0 : index
    %c0_2 = arith.constant 0 : index
    %3 = vector.load %arg3[%c0, %c0_1, %c0_2] : memref<1x4x360xbf16, #tpu.memory_space<vmem>>, vector<1x4x288xbf16>
    %4 = vector.shape_cast %3 : vector<1x4x288xbf16> to vector<4x288xbf16>
    %c0_3 = arith.constant 0 : index
    %c0_4 = arith.constant 0 : index
    %c0_5 = arith.constant 0 : index
    %5 = vector.load %arg4[%c0_3, %c0_4, %c0_5] : memref<16x8x4xbf16, #tpu.memory_space<vmem>>, vector<1x8x4xbf16>
    %6 = vector.shape_cast %5 : vector<1x8x4xbf16> to vector<8x4xbf16>
    %cst = arith.constant dense<0.000000e+00> : vector<8x288xf32>
    %7 = tpu.matmul %6, %4, %cst {dimension_numbers = #tpu.dot_dimension_numbers<[1], [0], [0], [1], [0, 0, 1, 1], [], []>} : vector<8x4xbf16>, vector<4x288xbf16>, vector<8x288xf32> -> vector<8x288xf32>
    %c0_6 = arith.constant 0 : index
    %c0_7 = arith.constant 0 : index
    %c1 = arith.constant 1 : index
    %8 = vector.load %arg3[%c0_6, %c0_7, %c1] : memref<1x4x360xbf16, #tpu.memory_space<vmem>>, vector<1x4x288xbf16>
    %9 = vector.shape_cast %8 : vector<1x4x288xbf16> to vector<4x288xbf16>
    %c1_8 = arith.constant 1 : index
    %c0_9 = arith.constant 0 : index
    %c0_10 = arith.constant 0 : index
    %10 = vector.load %arg4[%c1_8, %c0_9, %c0_10] : memref<16x8x4xbf16, #tpu.memory_space<vmem>>, vector<1x8x4xbf16>
    %11 = vector.shape_cast %10 : vector<1x8x4xbf16> to vector<8x4xbf16>
    %cst_11 = arith.constant dense<0.000000e+00> : vector<8x288xf32>
    %12 = tpu.matmul %11, %9, %cst_11 {dimension_numbers = #tpu.dot_dimension_numbers<[1], [0], [0], [1], [0, 0, 1, 1], [], []>} : vector<8x4xbf16>, vector<4x288xbf16>, vector<8x288xf32> -> vector<8x288xf32>
    %13 = arith.addf %7, %12 : vector<8x288xf32>
    %c0_12 = arith.constant 0 : index
    %c0_13 = arith.constant 0 : index
    %c2 = arith.constant 2 : index
    %14 = vector.load %arg3[%c0_12, %c0_13, %c2] : memref<1x4x360xbf16, #tpu.memory_space<vmem>>, vector<1x4x288xbf16>
    %15 = vector.shape_cast %14 : vector<1x4x288xbf16> to vector<4x288xbf16>
    %c2_14 = arith.constant 2 : index
    %c0_15 = arith.constant 0 : index
    %c0_16 = arith.constant 0 : index
    %16 = vector.load %arg4[%c2_14, %c0_15, %c0_16] : memref<16x8x4xbf16, #tpu.memory_space<vmem>>, vector<1x8x4xbf16>
    %17 = vector.shape_cast %16 : vector<1x8x4xbf16> to vector<8x4xbf16>
    %cst_17 = arith.constant dense<0.000000e+00> : vector<8x288xf32>
    %18 = tpu.matmul %17, %15, %cst_17 {dimension_numbers = #tpu.dot_dimension_numbers<[1], [0], [0], [1], [0, 0, 1, 1], [], []>} : vector<8x4xbf16>, vector<4x288xbf16>, vector<8x288xf32> -> vector<8x288xf32>
    %19 = arith.addf %13, %18 : vector<8x288xf32>
    %c0_18 = arith.constant 0 : index
    %c0_19 = arith.constant 0 : index
    %c3 = arith.constant 3 : index
    %20 = vector.load %arg3[%c0_18, %c0_19, %c3] : memref<1x4x360xbf16, #tpu.memory_space<vmem>>, vector<1x4x288xbf16>
    %21 = vector.shape_cast %20 : vector<1x4x288xbf16> to vector<4x288xbf16>
    %c3_20 = arith.constant 3 : index
    %c0_21 = arith.constant 0 : index
    %c0_22 = arith.constant 0 : index
    %22 = vector.load %arg4[%c3_20, %c0_21, %c0_22] : memref<16x8x4xbf16, #tpu.memory_space<vmem>>, vector<1x8x4xbf16>
    %23 = vector.shape_cast %22 : vector<1x8x4xbf16> to vector<8x4xbf16>
    %cst_23 = arith.constant dense<0.000000e+00> : vector<8x288xf32>
    %24 = tpu.matmul %23, %21, %cst_23 {dimension_numbers = #tpu.dot_dimension_numbers<[1], [0], [0], [1], [0, 0, 1, 1], [], []>} : vector<8x4xbf16>, vector<4x288xbf16>, vector<8x288xf32> -> vector<8x288xf32>
    %25 = arith.addf %19, %24 : vector<8x288xf32>
    %c0_24 = arith.constant 0 : index
    %c0_25 = arith.constant 0 : index
    %c18 = arith.constant 18 : index
    %26 = vector.load %arg3[%c0_24, %c0_25, %c18] : memref<1x4x360xbf16, #tpu.memory_space<vmem>>, vector<1x4x288xbf16>
    %27 = vector.shape_cast %26 : vector<1x4x288xbf16> to vector<4x288xbf16>
    %c4 = arith.constant 4 : index
    %c0_26 = arith.constant 0 : index
    %c0_27 = arith.constant 0 : index
    %28 = vector.load %arg4[%c4, %c0_26, %c0_27] : memref<16x8x4xbf16, #tpu.memory_space<vmem>>, vector<1x8x4xbf16>
    %29 = vector.shape_cast %28 : vector<1x8x4xbf16> to vector<8x4xbf16>
    %cst_28 = arith.constant dense<0.000000e+00> : vector<8x288xf32>
    %30 = tpu.matmul %29, %27, %cst_28 {dimension_numbers = #tpu.dot_dimension_numbers<[1], [0], [0], [1], [0, 0, 1, 1], [], []>} : vector<8x4xbf16>, vector<4x288xbf16>, vector<8x288xf32> -> vector<8x288xf32>
    %31 = arith.addf %25, %30 : vector<8x288xf32>
    %c0_29 = arith.constant 0 : index
    %c0_30 = arith.constant 0 : index
    %c19 = arith.constant 19 : index
    %32 = vector.load %arg3[%c0_29, %c0_30, %c19] : memref<1x4x360xbf16, #tpu.memory_space<vmem>>, vector<1x4x288xbf16>
    %33 = vector.shape_cast %32 : vector<1x4x288xbf16> to vector<4x288xbf16>
    %c5 = arith.constant 5 : index
    %c0_31 = arith.constant 0 : index
    %c0_32 = arith.constant 0 : index
    %34 = vector.load %arg4[%c5, %c0_31, %c0_32] : memref<16x8x4xbf16, #tpu.memory_space<vmem>>, vector<1x8x4xbf16>
    %35 = vector.shape_cast %34 : vector<1x8x4xbf16> to vector<8x4xbf16>
    %cst_33 = arith.constant dense<0.000000e+00> : vector<8x288xf32>
    %36 = tpu.matmul %35, %33, %cst_33 {dimension_numbers = #tpu.dot_dimension_numbers<[1], [0], [0], [1], [0, 0, 1, 1], [], []>} : vector<8x4xbf16>, vector<4x288xbf16>, vector<8x288xf32> -> vector<8x288xf32>
    %37 = arith.addf %31, %36 : vector<8x288xf32>
    %c0_34 = arith.constant 0 : index
    %c0_35 = arith.constant 0 : index
    %c20 = arith.constant 20 : index
    %38 = vector.load %arg3[%c0_34, %c0_35, %c20] : memref<1x4x360xbf16, #tpu.memory_space<vmem>>, vector<1x4x288xbf16>
    %39 = vector.shape_cast %38 : vector<1x4x288xbf16> to vector<4x288xbf16>
    %c6 = arith.constant 6 : index
    %c0_36 = arith.constant 0 : index
    %c0_37 = arith.constant 0 : index
    %40 = vector.load %arg4[%c6, %c0_36, %c0_37] : memref<16x8x4xbf16, #tpu.memory_space<vmem>>, vector<1x8x4xbf16>
    %41 = vector.shape_cast %40 : vector<1x8x4xbf16> to vector<8x4xbf16>
    %cst_38 = arith.constant dense<0.000000e+00> : vector<8x288xf32>
    %42 = tpu.matmul %41, %39, %cst_38 {dimension_numbers = #tpu.dot_dimension_numbers<[1], [0], [0], [1], [0, 0, 1, 1], [], []>} : vector<8x4xbf16>, vector<4x288xbf16>, vector<8x288xf32> -> vector<8x288xf32>
    %43 = arith.addf %37, %42 : vector<8x288xf32>
    %c0_39 = arith.constant 0 : index
    %c0_40 = arith.constant 0 : index
    %c21 = arith.constant 21 : index
    %44 = vector.load %arg3[%c0_39, %c0_40, %c21] : memref<1x4x360xbf16, #tpu.memory_space<vmem>>, vector<1x4x288xbf16>
    %45 = vector.shape_cast %44 : vector<1x4x288xbf16> to vector<4x288xbf16>
    %c7 = arith.constant 7 : index
    %c0_41 = arith.constant 0 : index
    %c0_42 = arith.constant 0 : index
    %46 = vector.load %arg4[%c7, %c0_41, %c0_42] : memref<16x8x4xbf16, #tpu.memory_space<vmem>>, vector<1x8x4xbf16>
    %47 = vector.shape_cast %46 : vector<1x8x4xbf16> to vector<8x4xbf16>
    %cst_43 = arith.constant dense<0.000000e+00> : vector<8x288xf32>
    %48 = tpu.matmul %47, %45, %cst_43 {dimension_numbers = #tpu.dot_dimension_numbers<[1], [0], [0], [1], [0, 0, 1, 1], [], []>} : vector<8x4xbf16>, vector<4x288xbf16>, vector<8x288xf32> -> vector<8x288xf32>
    %49 = arith.addf %43, %48 : vector<8x288xf32>
    %c0_44 = arith.constant 0 : index
    %c0_45 = arith.constant 0 : index
    %c36 = arith.constant 36 : index
    %50 = vector.load %arg3[%c0_44, %c0_45, %c36] : memref<1x4x360xbf16, #tpu.memory_space<vmem>>, vector<1x4x288xbf16>
    %51 = vector.shape_cast %50 : vector<1x4x288xbf16> to vector<4x288xbf16>
    %c8 = arith.constant 8 : index
    %c0_46 = arith.constant 0 : index
    %c0_47 = arith.constant 0 : index
    %52 = vector.load %arg4[%c8, %c0_46, %c0_47] : memref<16x8x4xbf16, #tpu.memory_space<vmem>>, vector<1x8x4xbf16>
    %53 = vector.shape_cast %52 : vector<1x8x4xbf16> to vector<8x4xbf16>
    %cst_48 = arith.constant dense<0.000000e+00> : vector<8x288xf32>
    %54 = tpu.matmul %53, %51, %cst_48 {dimension_numbers = #tpu.dot_dimension_numbers<[1], [0], [0], [1], [0, 0, 1, 1], [], []>} : vector<8x4xbf16>, vector<4x288xbf16>, vector<8x288xf32> -> vector<8x288xf32>
    %55 = arith.addf %49, %54 : vector<8x288xf32>
    %c0_49 = arith.constant 0 : index
    %c0_50 = arith.constant 0 : index
    %c37 = arith.constant 37 : index
    %56 = vector.load %arg3[%c0_49, %c0_50, %c37] : memref<1x4x360xbf16, #tpu.memory_space<vmem>>, vector<1x4x288xbf16>
    %57 = vector.shape_cast %56 : vector<1x4x288xbf16> to vector<4x288xbf16>
    %c9 = arith.constant 9 : index
    %c0_51 = arith.constant 0 : index
    %c0_52 = arith.constant 0 : index
    %58 = vector.load %arg4[%c9, %c0_51, %c0_52] : memref<16x8x4xbf16, #tpu.memory_space<vmem>>, vector<1x8x4xbf16>
    %59 = vector.shape_cast %58 : vector<1x8x4xbf16> to vector<8x4xbf16>
    %cst_53 = arith.constant dense<0.000000e+00> : vector<8x288xf32>
    %60 = tpu.matmul %59, %57, %cst_53 {dimension_numbers = #tpu.dot_dimension_numbers<[1], [0], [0], [1], [0, 0, 1, 1], [], []>} : vector<8x4xbf16>, vector<4x288xbf16>, vector<8x288xf32> -> vector<8x288xf32>
    %61 = arith.addf %55, %60 : vector<8x288xf32>
    %c0_54 = arith.constant 0 : index
    %c0_55 = arith.constant 0 : index
    %c38 = arith.constant 38 : index
    %62 = vector.load %arg3[%c0_54, %c0_55, %c38] : memref<1x4x360xbf16, #tpu.memory_space<vmem>>, vector<1x4x288xbf16>
    %63 = vector.shape_cast %62 : vector<1x4x288xbf16> to vector<4x288xbf16>
    %c10 = arith.constant 10 : index
    %c0_56 = arith.constant 0 : index
    %c0_57 = arith.constant 0 : index
    %64 = vector.load %arg4[%c10, %c0_56, %c0_57] : memref<16x8x4xbf16, #tpu.memory_space<vmem>>, vector<1x8x4xbf16>
    %65 = vector.shape_cast %64 : vector<1x8x4xbf16> to vector<8x4xbf16>
    %cst_58 = arith.constant dense<0.000000e+00> : vector<8x288xf32>
    %66 = tpu.matmul %65, %63, %cst_58 {dimension_numbers = #tpu.dot_dimension_numbers<[1], [0], [0], [1], [0, 0, 1, 1], [], []>} : vector<8x4xbf16>, vector<4x288xbf16>, vector<8x288xf32> -> vector<8x288xf32>
    %67 = arith.addf %61, %66 : vector<8x288xf32>
    %c0_59 = arith.constant 0 : index
    %c0_60 = arith.constant 0 : index
    %c39 = arith.constant 39 : index
    %68 = vector.load %arg3[%c0_59, %c0_60, %c39] : memref<1x4x360xbf16, #tpu.memory_space<vmem>>, vector<1x4x288xbf16>
    %69 = vector.shape_cast %68 : vector<1x4x288xbf16> to vector<4x288xbf16>
    %c11 = arith.constant 11 : index
    %c0_61 = arith.constant 0 : index
    %c0_62 = arith.constant 0 : index
    %70 = vector.load %arg4[%c11, %c0_61, %c0_62] : memref<16x8x4xbf16, #tpu.memory_space<vmem>>, vector<1x8x4xbf16>
    %71 = vector.shape_cast %70 : vector<1x8x4xbf16> to vector<8x4xbf16>
    %cst_63 = arith.constant dense<0.000000e+00> : vector<8x288xf32>
    %72 = tpu.matmul %71, %69, %cst_63 {dimension_numbers = #tpu.dot_dimension_numbers<[1], [0], [0], [1], [0, 0, 1, 1], [], []>} : vector<8x4xbf16>, vector<4x288xbf16>, vector<8x288xf32> -> vector<8x288xf32>
    %73 = arith.addf %67, %72 : vector<8x288xf32>
    %c0_64 = arith.constant 0 : index
    %c0_65 = arith.constant 0 : index
    %c54 = arith.constant 54 : index
    %74 = vector.load %arg3[%c0_64, %c0_65, %c54] : memref<1x4x360xbf16, #tpu.memory_space<vmem>>, vector<1x4x288xbf16>
    %75 = vector.shape_cast %74 : vector<1x4x288xbf16> to vector<4x288xbf16>
    %c12 = arith.constant 12 : index
    %c0_66 = arith.constant 0 : index
    %c0_67 = arith.constant 0 : index
    %76 = vector.load %arg4[%c12, %c0_66, %c0_67] : memref<16x8x4xbf16, #tpu.memory_space<vmem>>, vector<1x8x4xbf16>
    %77 = vector.shape_cast %76 : vector<1x8x4xbf16> to vector<8x4xbf16>
    %cst_68 = arith.constant dense<0.000000e+00> : vector<8x288xf32>
    %78 = tpu.matmul %77, %75, %cst_68 {dimension_numbers = #tpu.dot_dimension_numbers<[1], [0], [0], [1], [0, 0, 1, 1], [], []>} : vector<8x4xbf16>, vector<4x288xbf16>, vector<8x288xf32> -> vector<8x288xf32>
    %79 = arith.addf %73, %78 : vector<8x288xf32>
    %c0_69 = arith.constant 0 : index
    %c0_70 = arith.constant 0 : index
    %c55 = arith.constant 55 : index
    %80 = vector.load %arg3[%c0_69, %c0_70, %c55] : memref<1x4x360xbf16, #tpu.memory_space<vmem>>, vector<1x4x288xbf16>
    %81 = vector.shape_cast %80 : vector<1x4x288xbf16> to vector<4x288xbf16>
    %c13 = arith.constant 13 : index
    %c0_71 = arith.constant 0 : index
    %c0_72 = arith.constant 0 : index
    %82 = vector.load %arg4[%c13, %c0_71, %c0_72] : memref<16x8x4xbf16, #tpu.memory_space<vmem>>, vector<1x8x4xbf16>
    %83 = vector.shape_cast %82 : vector<1x8x4xbf16> to vector<8x4xbf16>
    %cst_73 = arith.constant dense<0.000000e+00> : vector<8x288xf32>
    %84 = tpu.matmul %83, %81, %cst_73 {dimension_numbers = #tpu.dot_dimension_numbers<[1], [0], [0], [1], [0, 0, 1, 1], [], []>} : vector<8x4xbf16>, vector<4x288xbf16>, vector<8x288xf32> -> vector<8x288xf32>
    %85 = arith.addf %79, %84 : vector<8x288xf32>
    %c0_74 = arith.constant 0 : index
    %c0_75 = arith.constant 0 : index
    %c56 = arith.constant 56 : index
    %86 = vector.load %arg3[%c0_74, %c0_75, %c56] : memref<1x4x360xbf16, #tpu.memory_space<vmem>>, vector<1x4x288xbf16>
    %87 = vector.shape_cast %86 : vector<1x4x288xbf16> to vector<4x288xbf16>
    %c14 = arith.constant 14 : index
    %c0_76 = arith.constant 0 : index
    %c0_77 = arith.constant 0 : index
    %88 = vector.load %arg4[%c14, %c0_76, %c0_77] : memref<16x8x4xbf16, #tpu.memory_space<vmem>>, vector<1x8x4xbf16>
    %89 = vector.shape_cast %88 : vector<1x8x4xbf16> to vector<8x4xbf16>
    %cst_78 = arith.constant dense<0.000000e+00> : vector<8x288xf32>
    %90 = tpu.matmul %89, %87, %cst_78 {dimension_numbers = #tpu.dot_dimension_numbers<[1], [0], [0], [1], [0, 0, 1, 1], [], []>} : vector<8x4xbf16>, vector<4x288xbf16>, vector<8x288xf32> -> vector<8x288xf32>
    %91 = arith.addf %85, %90 : vector<8x288xf32>
    %c0_79 = arith.constant 0 : index
    %c0_80 = arith.constant 0 : index
    %c57 = arith.constant 57 : index
    %92 = vector.load %arg3[%c0_79, %c0_80, %c57] : memref<1x4x360xbf16, #tpu.memory_space<vmem>>, vector<1x4x288xbf16>
    %93 = vector.shape_cast %92 : vector<1x4x288xbf16> to vector<4x288xbf16>
    %c15 = arith.constant 15 : index
    %c0_81 = arith.constant 0 : index
    %c0_82 = arith.constant 0 : index
    %94 = vector.load %arg4[%c15, %c0_81, %c0_82] : memref<16x8x4xbf16, #tpu.memory_space<vmem>>, vector<1x8x4xbf16>
    %95 = vector.shape_cast %94 : vector<1x8x4xbf16> to vector<8x4xbf16>
    %cst_83 = arith.constant dense<0.000000e+00> : vector<8x288xf32>
    %96 = tpu.matmul %95, %93, %cst_83 {dimension_numbers = #tpu.dot_dimension_numbers<[1], [0], [0], [1], [0, 0, 1, 1], [], []>} : vector<8x4xbf16>, vector<4x288xbf16>, vector<8x288xf32> -> vector<8x288xf32>
    %97 = arith.addf %91, %96 : vector<8x288xf32>
    %c0_84 = arith.constant 0 : index
    %c0_85 = arith.constant 0 : index
    %98 = vector.load %arg7[%c0_84, %c0_85] : memref<8x288xf32, #tpu.memory_space<vmem>>, vector<8x288xf32>
    %99 = arith.addf %98, %97 : vector<8x288xf32>
    %c0_86 = arith.constant 0 : index
    %c0_87 = arith.constant 0 : index
    %100 = vector.load %arg7[%c0_86, %c0_87] : memref<8x288xf32, #tpu.memory_space<vmem>>, vector<8x288xf32>
    tpu.vector_store %arg7[%c0_86, %c0_87], %99 {strides = array<i32>} : memref<8x288xf32, #tpu.memory_space<vmem>>, vector<8x288xf32>,
    %c0_i32_88 = arith.constant 0 : i32
    %101 = arith.cmpi eq, %arg2, %c0_i32_88 : i32
    %102 = arith.extui %101 : i1 to i32
    %c0_i32_89 = arith.constant 0 : i32
    %103 = arith.cmpi ne, %102, %c0_i32_89 : i32
    scf.if %103 {
      %c0_90 = arith.constant 0 : index
      %c0_91 = arith.constant 0 : index
      %104 = vector.load %arg7[%c0_90, %c0_91] : memref<8x288xf32, #tpu.memory_space<vmem>>, vector<8x288xf32>
      %c0_92 = arith.constant 0 : index
      %c0_93 = arith.constant 0 : index
      %105 = vector.load %arg5[%c0_92, %c0_93] : memref<1x288xf32, #tpu.memory_space<vmem>>, vector<1x288xf32>
      %106 = vector.broadcast %105 : vector<1x288xf32> to vector<8x288xf32>
      %107 = arith.mulf %104, %106 : vector<8x288xf32>
      %cst_94 = arith.constant dense<0.000000e+00> : vector<8xf32>
      %108 = vector.multi_reduction <add>, %107, %cst_94 [1] : vector<8x288xf32> to vector<8xf32>
      %109 = vector.shape_cast %108 : vector<8xf32> to vector<8x1xf32>
      %110 = arith.mulf %107, %107 : vector<8x288xf32>
      %cst_95 = arith.constant dense<0.000000e+00> : vector<8xf32>
      %111 = vector.multi_reduction <add>, %110, %cst_95 [1] : vector<8x288xf32> to vector<8xf32>
      %112 = vector.shape_cast %111 : vector<8xf32> to vector<8x1xf32>
      %cst_96 = arith.constant 0.00444444455 : f32
      %113 = vector.broadcast %cst_96 : f32 to vector<8x1xf32>
      %114 = arith.mulf %109, %113 : vector<8x1xf32>
      %cst_97 = arith.constant 0.00444444455 : f32
      %115 = vector.broadcast %cst_97 : f32 to vector<8x1xf32>
      %116 = arith.mulf %112, %115 : vector<8x1xf32>
      %117 = arith.mulf %114, %114 : vector<8x1xf32>
      %118 = arith.subf %116, %117 : vector<8x1xf32>
      %119 = vector.broadcast %114 : vector<8x1xf32> to vector<8x288xf32>
      %120 = arith.subf %104, %119 : vector<8x288xf32>
      %cst_98 = arith.constant 9.99999974E-6 : f32
      %121 = vector.broadcast %cst_98 : f32 to vector<8x1xf32>
      %122 = arith.addf %118, %121 : vector<8x1xf32>
      %123 = math.rsqrt %122 : vector<8x1xf32>
      %124 = vector.broadcast %123 : vector<8x1xf32> to vector<8x288xf32>
      %125 = arith.mulf %120, %124 : vector<8x288xf32>
      %cst_99 = arith.constant 0.000000e+00 : f32
      %126 = vector.broadcast %cst_99 : f32 to vector<8x288xf32>
      %127 = arith.cmpf oge, %125, %126 : vector<8x288xf32>
      %cst_100 = arith.constant 2.000000e-01 : f32
      %128 = vector.broadcast %cst_100 : f32 to vector<8x288xf32>
      %129 = arith.mulf %128, %125 : vector<8x288xf32>
      %130 = arith.select %127, %125, %129 : vector<8x288xi1>, vector<8x288xf32>
      %131 = arith.truncf %130 : vector<8x288xf32> to vector<8x288xbf16>
      %c0_101 = arith.constant 0 : index
      %c0_102 = arith.constant 0 : index
      %c0_103 = arith.constant 0 : index
      %132 = vector.load %arg6[%c0_101, %c0_102, %c0_103] : memref<1x8x288xbf16, #tpu.memory_space<vmem>>, vector<1x8x288xbf16>
      %133 = vector.shape_cast %132 : vector<1x8x288xbf16> to vector<8x288xbf16>
      %134 = vector.shape_cast %131 : vector<8x288xbf16> to vector<1x8x288xbf16>
      tpu.vector_store %arg6[%c0_101, %c0_102, %c0_103], %134 {strides = array<i32>} : memref<1x8x288xbf16, #tpu.memory_space<vmem>>, vector<1x8x288xbf16>,
    } else {
    }
    return
  }
  func.func @transform_0(%arg0: i32, %arg1: i32, %arg2: i32) -> (i32, i32, i32) {
    %c0_i32 = arith.constant 0 : i32
    %c0_i32_0 = arith.constant 0 : i32
    return %arg0, %arg2, %c0_i32 : i32, i32, i32
  }
  func.func @transform_1(%arg0: i32, %arg1: i32, %arg2: i32) -> (i32, i32, i32) {
    %c0_i32 = arith.constant 0 : i32
    %c0_i32_0 = arith.constant 0 : i32
    return %c0_i32, %arg1, %arg2 : i32, i32, i32
  }
  func.func @transform_2(%arg0: i32, %arg1: i32, %arg2: i32) -> (i32, i32) {
    %c0_i32 = arith.constant 0 : i32
    %c0_i32_0 = arith.constant 0 : i32
    %c0_i32_1 = arith.constant 0 : i32
    return %c0_i32, %c0_i32_0 : i32, i32
  }
  func.func @transform_3(%arg0: i32, %arg1: i32, %arg2: i32) -> (i32, i32, i32) {
    %c0_i32 = arith.constant 0 : i32
    %c0_i32_0 = arith.constant 0 : i32
    return %arg0, %arg1, %c0_i32 : i32, i32, i32
  }
}

</mosaic_0001>

<bundles_post_ra>
// kernel: tpu_custom_call.1
= control target key start
LH: loop header
LB: loop body
LE: loop exit
PB: predicated region body
PF: predicated region fallthrough
CT: control target
= control target key end

     0   :  { %8 = vsyncpa [#allocation4], 0  ;;  %s2169_s0 = inlined_call_operand.vmem [shape: bf16[2,4,360], index: 0, kind: input, shape index: {}]   ;;  %s2170_s1 = inlined_call_operand.vmem [shape: bf16[16,8,4], index: 1, kind: input, shape index: {}]   ;;  %s2171_s2 = inlined_call_operand.vmem [shape: f32[1,288], index: 2, kind: input, shape index: {}]   ;;  %s2172_s3 = inlined_call_operand.hbm [shape: bf16[2,8,288], index: 3, kind: output, shape index: {}]  }
   0x1   :  { %10 = vsyncpa [#allocation4 + $0x1], 0  ;;  %s1862_s12 = smov 0   ;;  %s1864_s13 = smov 0  }
   0x2   :  { %s1866_s14 = smov 0   ;;  %s1868_s15 = smov 0  }
   0x3   :  { %s1870_s16 = smov 0   ;;  %s1872_s17 = smov 0  }
   0x4 LB: > { %s1597_s18 = sadd.s32 4294967295, %s1824_s17   ;;  %s1598_s19 = sadd.s32 4294967294, %s1824_s17   ;;  %s1824_s17 = sphi %s1872_s17, %s16_s17   ;;  %s1820_s16 = sphi %s1870_s16, %s2179_s16   ;;  %s1816_s15 = sphi %s1868_s15, %s2178_s15   ;;  %s1812_s14 = sphi %s1866_s14, %s2177_s14   ;;  %s1808_s13 = sphi %s1864_s13, %s2176_s13   ;;  %s1804_s12 = sphi %s1862_s12, %s2175_s12  }
   0x5   : > { %s35_s20 = sadd.s32 1, %s1820_s16  ;;  %s121_s21 = sadd.s32 1, %s1812_s14 }
   0x6   : > { %p37_p0 = scmp.ge.s32.totalorder %s35_s20, 2  ;;  %p131_p1 = scmp.ne.s32.totalorder %s1812_s14, %s1808_s13 }
   0x7   : > { %p132_p2 = scmp.eq.s32.totalorder %s1597_s18, 1  ;;  %p137_p3 = scmp.ne.s32.totalorder %s1808_s13, %s1804_s12 }
   0x8   : > { %s2181_s20 = smov (%p37_p0, %s35_s20), 0  ;;  %p138_p5 = scmp.eq.s32.totalorder %s1598_s19, 1 }
   0x9   : > { %p1902_p4 = por %p132_p2, %p131_p1  ;;  %s116_s23 = ssub.s32 %s1820_s16, %s2181_s20 }
   0xa   : > { %p1602_p6 = scmp.ge.s32.totalorder %s1824_s17, 1  ;;  %p119_p7 = scmp.eq.s32.totalorder %s116_s23, 0 }
   0xb   : > { %p1909_p8 = por %p138_p5, %p137_p3  ;;  %p181_p9 = scmp.lt.s32.totalorder %s1824_s17, 3 }
   0xc   : > { %s1915_s25 = scalar_select %p119_p7, %s1812_s14, %s121_s21  }
   0xd   : > { %p182_p10 = pnand %p1602_p6, %p181_p9 }
   0xe   : > { %p216_p11 = scmp.lt.s32.totalorder (!%p182_p10), %s1816_s15, 1  ;;  %s1826_s4 = smov (!%p182_p10), 127  }
   0xf   : > { %185 = sbr.rel (%p182_p10) target bundleno = 637 (0x27d), region = 32  ;;  %s1827_s5 = smov (!%p182_p10), 126  }
  0x10   : > { %s1828_s6 = smov (!%p182_p10), 125   ;;  %s1829_s7 = smov (!%p182_p10), 110  }
  0x11   : > { %s1830_s8 = smov (!%p182_p10), 109   ;;  %s1831_s9 = smov (!%p182_p10), 108  }
  0x12   : > { %s1832_s10 = smov (!%p182_p10), 107   ;;  %s1833_s11 = smov (!%p182_p10), 92  }
  0x13   : > { %s1834_s18 = smov (!%p182_p10), 91   ;;  %s1835_s23 = smov (!%p182_p10), 90  }
  0x14   : > { %s217_s26 = scalar_select %p216_p11, %s1816_s15, 1  ;;  %vm266_vm0 = vcmask 1041408   ;;  %vm262_vm1 = vcmask 31744   ;;  %v1946_v42 = vld [vmem:[%s2170_s1] sm:$0xf]  ;;  %vm259_vm2 = vcmask 1039360  }
  0x15   : > { %vm384_vm3 = vcmask 1031168   ;;  %v1604_v61 = vld [vmem:[%s2170_s1 + $0x4] sm:$0xf]  ;;  %vm458_vm4 = vcmask 1022976   ;;  %vm606_vm5 = vcmask 891904   ;;  %vm532_vm6 = vcmask 900096  }
  0x16   : > { %s1671_s27 = smul.u32 6, %s217_s26  ;;  %s1836_s26 = smov 89   ;;  %vm680_vm7 = vcmask 883712   ;;  %vm754_vm8 = vcmask 875520   ;;  %vm902_vm9 = vcmask 744448   ;;  %vm828_vm10 = vcmask 752640  }
  0x17   : > { %vm976_vm11 = vcmask 736256   ;;  %vm1050_vm12 = vcmask 728064   ;;  %vm1198_vm13 = vcmask 596992   ;;  %vm1124_vm14 = vcmask 605184   ;;  %s213_s29 = sand.u32 1, %s1808_s13  }
  0x18   : > { %s1922_s30 = scalar_lea.vmem %s2169_s0, %s1671_s27  ;;  %s1837_s27 = smov 74   ;;  %vm1272_vm15 = vcmask 588800  }
  0x19   : > { %v241_v0 = vld [vmem:[%s1922_s30] sm:$0x3f] }
  0x1a   : > { %246 = vst [vmem:[#allocation1] ss:$4 sm:$0xff] %v241_v0  ;;  %v367_v4 = vld [vmem:[%s1922_s30] sm:$0x3f] }
  0x1b   : > { %v441_v8 = vld [vmem:[%s1922_s30] sm:$0x3f] }
  0x1c   : > { %v515_v12 = vld [vmem:[%s1922_s30] sm:$0x3f] }
  0x1d   : > { %v589_v16 = vld [vmem:[%s1922_s30] sm:$0x3f] }
  0x1e   : > { %v663_v20 = vld [vmem:[%s1922_s30] sm:$0x3f] }
  0x1f   : > { %v737_v24 = vld [vmem:[%s1922_s30] sm:$0x3f] }
  0x20   : > { %v811_v28 = vld [vmem:[%s1922_s30] sm:$0x3f] }
  0x21   : > { %v251_v1 = vld.sshfl [vmem:[#allocation1 + $0x10] sm:$0xff pattern:$0x73625140]  ;;  %v249_v2 = vld.sshfl [vmem:[#allocation1 + $0x8] sm:$0xff pattern:$0x73625140] }
  0x22   : > { %257 = vrot.lane.b32.xlu0 %v251_v1, %s1826_s4  ;;  %255 = vrot.lane.b32.xlu1 %v249_v2, %s1826_s4  ;;  %v247_v3 = vld.sshfl [vmem:[#allocation1] sm:$0xff pattern:$0x73625140] }
  0x23   : > { %315 = vst [vmem:[#allocation1] ss:$4 sm:$0xff] %v241_v0  ;;  %v885_v32 = vld [vmem:[%s1922_s30] sm:$0x3f] }
  0x24   : > { %v959_v36 = vld [vmem:[%s1922_s30] sm:$0x3f] }
  0x25   : > { %v1033_v41 = vld [vmem:[%s1922_s30] sm:$0x3f] }
  0x26   : > { %v1107_v46 = vld [vmem:[%s1922_s30] sm:$0x3f] }
  0x27   : > { %v1181_v50 = vld [vmem:[%s1922_s30] sm:$0x3f] }
  0x28   : > { %v1255_v0 = vld [vmem:[%s1922_s30] sm:$0x3f] }
  0x2a   : > { %253 = vrot.lane.b32.xlu0 %v247_v3, %s1826_s4  ;;  %v1926_v5 = vld.sshfl [vmem:[#allocation1] sm:$0xff pattern:$0x73625140]  ;;  %v1928_v6 = vld.sshfl [vmem:[#allocation1 + $0x8] sm:$0xff pattern:$0x73625140] }
  0x2b   : > { %v1930_v7 = vld.sshfl [vmem:[#allocation1 + $0x10] sm:$0xff pattern:$0x73625140]  ;;  %v322_v40 = vsel %vm266_vm0, %v1926_v5, 0  ;;  %s1838_s4 = smov 73  }
  0x2c   : > { %371 = vst [vmem:[#allocation1] ss:$4 sm:$0xff] %v367_v4  ;;  %335 = vmatpush.bf16.msra.mxu3 %v322_v40  ;;  %v326_v59 = vsel %vm266_vm0, %v1930_v7, 0  ;;  %v1971_v4 = vld [vmem:[%s2170_s1 + $0x8] sm:$0xf] }
  0x2f   : > { %1608 = vmatmul.msk.bf16.vlgmr.msra.gmra.mxu3 %vm262_vm1, %v1946_v42 }
  0x33   : > { %v372_v9 = vld.sshfl [vmem:[#allocation1] sm:$0xff pattern:$0x73625140]  ;;  %v376_v10 = vld.sshfl [vmem:[#allocation1 + $0x10] sm:$0xff pattern:$0x73625140] }
  0x34   : > { %378 = vrot.lane.b32.xlu1 %v372_v9, %s1827_s5  ;;  %v374_v11 = vld.sshfl [vmem:[#allocation1 + $0x8] sm:$0xff pattern:$0x73625140]  ;;  %v324_v9 = vsel %vm266_vm0, %v1928_v6, 0 }
  0x35   : > { %380 = vrot.lane.b32.xlu2 %v374_v11, %s1827_s5  ;;  %445 = vst [vmem:[#allocation1] ss:$4 sm:$0xff] %v441_v8 }
  0x3c   : > { %v450_v13 = vld.sshfl [vmem:[#allocation1 + $0x10] sm:$0xff pattern:$0x73625140]  ;;  %v446_v14 = vld.sshfl [vmem:[#allocation1] sm:$0xff pattern:$0x73625140] }
  0x3d   : > { %456 = vrot.lane.b32.xlu1 %v450_v13, %s1828_s6  ;;  %v448_v15 = vld.sshfl [vmem:[#allocation1 + $0x8] sm:$0xff pattern:$0x73625140]  ;;  %382 = vrot.lane.b32.xlu2 %v376_v10, %s1827_s5  ;;  %s1672_s5 = smul.u32 12, %s1816_s15 }
  0x3e   : > { %454 = vrot.lane.b32.xlu0 %v448_v15, %s1828_s6  ;;  %519 = vst [vmem:[#allocation1] ss:$4 sm:$0xff] %v515_v12  ;;  %v1329_v12 = vld [vmem:[%s1922_s30] sm:$0x3f] }
  0x3f   : > { %s1492_s30 = scalar_lea.hbm %s2172_s3, %s1672_s5 }
  0x45   : > { %v524_v17 = vld.sshfl [vmem:[#allocation1 + $0x10] sm:$0xff pattern:$0x73625140]  ;;  %v520_v18 = vld.sshfl [vmem:[#allocation1] sm:$0xff pattern:$0x73625140]  ;;  %452 = vrot.lane.b32.xlu2 %v446_v14, %s1828_s6 }
  0x46   : > { %530 = vrot.lane.b32.xlu0 %v524_v17, %s1829_s7  ;;  %v522_v19 = vld.sshfl [vmem:[#allocation1 + $0x8] sm:$0xff pattern:$0x73625140] }
  0x47   : > { %593 = vst [vmem:[#allocation1] ss:$4 sm:$0xff] %v589_v16 }
  0x4e   : > { %v594_v21 = vld.sshfl [vmem:[#allocation1] sm:$0xff pattern:$0x73625140]  ;;  %v598_v22 = vld.sshfl [vmem:[#allocation1 + $0x10] sm:$0xff pattern:$0x73625140]  ;;  %526 = vrot.lane.b32.xlu0 %v520_v18, %s1829_s7 }
  0x4f   : > { %600 = vrot.lane.b32.xlu1 %v594_v21, %s1830_s8  ;;  %v596_v23 = vld.sshfl [vmem:[#allocation1 + $0x8] sm:$0xff pattern:$0x73625140] }
  0x50   : > { %602 = vrot.lane.b32.xlu2 %v596_v23, %s1830_s8  ;;  %667 = vst [vmem:[#allocation1] ss:$4 sm:$0xff] %v663_v20 }
  0x57   : > { %528 = vrot.lane.b32.xlu1 %v522_v19, %s1829_s7  ;;  %v670_v25 = vld.sshfl [vmem:[#allocation1 + $0x8] sm:$0xff pattern:$0x73625140]  ;;  %v672_v26 = vld.sshfl [vmem:[#allocation1 + $0x10] sm:$0xff pattern:$0x73625140] }
  0x58   : > { %676 = vrot.lane.b32.xlu0 %v670_v25, %s1831_s9  ;;  %v668_v27 = vld.sshfl [vmem:[#allocation1] sm:$0xff pattern:$0x73625140]  ;;  %s1839_s7 = smov 72   ;;  %v1615_v25 = vld [vmem:[%s2170_s1 + $0xc] sm:$0xf] }
  0x59   : > { %674 = vrot.lane.b32.xlu2 %v668_v27, %s1831_s9  ;;  %741 = vst [vmem:[#allocation1] ss:$4 sm:$0xff] %v737_v24 }
  0x5f   : > { %678 = vrot.lane.b32.xlu1 %v672_v26, %s1831_s9  ;;  %s1840_s9 = smov 71  }
  0x60   : > { %v746_v29 = vld.sshfl [vmem:[#allocation1 + $0x10] sm:$0xff pattern:$0x73625140]  ;;  %v742_v30 = vld.sshfl [vmem:[#allocation1] sm:$0xff pattern:$0x73625140] }
  0x61   : > { %604 = vrot.lane.b32.xlu2 %v598_v22, %s1830_s8  ;;  %v744_v31 = vld.sshfl [vmem:[#allocation1 + $0x8] sm:$0xff pattern:$0x73625140] }
  0x62   : > { %750 = vrot.lane.b32.xlu0 %v744_v31, %s1832_s10  ;;  %815 = vst [vmem:[#allocation1] ss:$4 sm:$0xff] %v811_v28 }
  0x67   : > { %752 = vrot.lane.b32.xlu1 %v746_v29, %s1832_s10 }
  0x69   : > { %v816_v33 = vld.sshfl [vmem:[#allocation1] sm:$0xff pattern:$0x73625140]  ;;  %v818_v34 = vld.sshfl [vmem:[#allocation1 + $0x8] sm:$0xff pattern:$0x73625140]  ;;  %748 = vrot.lane.b32.xlu2 %v742_v30, %s1832_s10 }
  0x6a   : > { %v820_v35 = vld.sshfl [vmem:[#allocation1 + $0x10] sm:$0xff pattern:$0x73625140]  ;;  %s1479_s10 = scalar_lea.sflag [#allocation4], %s213_s29 }
  0x6b   : > { %889 = vst [vmem:[#allocation1] ss:$4 sm:$0xff] %v885_v32  ;;  %826 = vrot.lane.b32.xlu0 %v820_v35, %s1833_s11 }
  0x72   : > { %v890_v37 = vld.sshfl [vmem:[#allocation1] sm:$0xff pattern:$0x73625140]  ;;  %v894_v38 = vld.sshfl [vmem:[#allocation1 + $0x10] sm:$0xff pattern:$0x73625140] }
  0x73   : > { %896 = vrot.lane.b32.xlu1 %v890_v37, %s1834_s18  ;;  %822 = vrot.lane.b32.xlu0 %v816_v33, %s1833_s11  ;;  %v892_v39 = vld.sshfl [vmem:[#allocation1 + $0x8] sm:$0xff pattern:$0x73625140] }
  0x74   : > { %898 = vrot.lane.b32.xlu2 %v892_v39, %s1834_s18  ;;  %963 = vst [vmem:[#allocation1] ss:$4 sm:$0xff] %v959_v36 }
  0x7b   : > { %824 = vrot.lane.b32.xlu1 %v818_v34, %s1833_s11  ;;  %v966_v43 = vld.sshfl [vmem:[#allocation1 + $0x8] sm:$0xff pattern:$0x73625140]  ;;  %v968_v44 = vld.sshfl [vmem:[#allocation1 + $0x10] sm:$0xff pattern:$0x73625140] }
  0x7c   : > { %972 = vrot.lane.b32.xlu0 %v966_v43, %s1835_s23  ;;  %v964_v45 = vld.sshfl [vmem:[#allocation1] sm:$0xff pattern:$0x73625140] }
  0x7d   : > { %970 = vrot.lane.b32.xlu2 %v964_v45, %s1835_s23  ;;  %1037 = vst [vmem:[#allocation1] ss:$4 sm:$0xff] %v1033_v41 }
  0x83   : > { %974 = vrot.lane.b32.xlu1 %v968_v44, %s1835_s23  ;;  %v1619_v44 = vld [vmem:[%s2170_s1 + $0x10] sm:$0xf]  ;;  %s1766_s23 = scalar_lea.hbm %s2172_s3, 24 }
  0x84   : > { %v1042_v47 = vld.sshfl [vmem:[#allocation1 + $0x10] sm:$0xff pattern:$0x73625140]  ;;  %v1038_v48 = vld.sshfl [vmem:[#allocation1] sm:$0xff pattern:$0x73625140] }
  0x85   : > { %900 = vrot.lane.b32.xlu2 %v894_v38, %s1834_s18  ;;  %v1040_v49 = vld.sshfl [vmem:[#allocation1 + $0x8] sm:$0xff pattern:$0x73625140]  ;;  %v1623_v38 = vld [vmem:[%s2170_s1 + $0x14] sm:$0xf] }
  0x86   : > { %1046 = vrot.lane.b32.xlu0 %v1040_v49, %s1836_s26  ;;  %1111 = vst [vmem:[#allocation1] ss:$4 sm:$0xff] %v1107_v46 }
  0x8b   : > { %1048 = vrot.lane.b32.xlu1 %v1042_v47, %s1836_s26 }
  0x8d   : > { %v1112_v51 = vld.sshfl [vmem:[#allocation1] sm:$0xff pattern:$0x73625140]  ;;  %v1114_v52 = vld.sshfl [vmem:[#allocation1 + $0x8] sm:$0xff pattern:$0x73625140]  ;;  %1044 = vrot.lane.b32.xlu2 %v1038_v48, %s1836_s26 }
  0x8e   : > { %v1116_v53 = vld.sshfl [vmem:[#allocation1 + $0x10] sm:$0xff pattern:$0x73625140] }
  0x8f   : > { %v381_v54 = vpop.permute.xlu2 %380  ;;  %1185 = vst [vmem:[#allocation1] ss:$4 sm:$0xff] %v1181_v50  ;;  %1122 = vrot.lane.b32.xlu0 %v1116_v53, %s1837_s27 }
  0x94   : > { %v258_v55 = vpop.permute.xlu0 %257  ;;  %v256_v56 = vpop.permute.xlu1 %255 }
  0x95   : > { %v261_v57 = vsel %vm259_vm2, %v256_v56, %v258_v55  ;;  %v274_v58 = vsel %vm266_vm0, %v258_v55, 0 }
  0x96   : > { %v271_v60 = vsel %vm266_vm0, %v261_v57, 0  ;;  %309 = vmatpush.bf16.msra.mxu2 %v274_v58  ;;  %v1186_v63 = vld.sshfl [vmem:[#allocation1] sm:$0xff pattern:$0x73625140]  ;;  %v1627_v57 = vld [vmem:[%s2170_s1 + $0x18] sm:$0xf] }
  0x97   : > { %296 = vmatpush.bf16.msra.mxu1 %v271_v60  ;;  %v383_v62 = vpop.permute.xlu2 %382  ;;  %1118 = vrot.lane.b32.xlu0 %v1112_v51, %s1837_s27  ;;  %v1190_v2 = vld.sshfl [vmem:[#allocation1 + $0x10] sm:$0xff pattern:$0x73625140]  ;;  %v1188_v5 = vld.sshfl [vmem:[#allocation1 + $0x8] sm:$0xff pattern:$0x73625140] }
  0x98   : > { %v386_v1 = vsel %vm384_vm3, %v381_v54, %v383_v62  ;;  %1192 = vrot.lane.b32.xlu1 %v1186_v63, %s1838_s4  ;;  %1194 = vrot.lane.b32.xlu2 %v1188_v5, %s1838_s4  ;;  %1259 = vst [vmem:[#allocation1] ss:$4 sm:$0xff] %v1255_v0  ;;  %v397_v11 = vsel %vm266_vm0, %v383_v62, 0  ;;  %v1631_v5 = vld [vmem:[%s2170_s1 + $0x1c] sm:$0xf] }
  0x99   : > { %1607 = vmatmul.msk.bf16.vlgmr.msra.gmra.mxu2 %vm262_vm1, %v1604_v61  ;;  %v394_v3 = vsel %vm266_vm0, %v386_v1, 0 }
  0x9a   : > { %1606 = vmatmul.msk.bf16.vlgmr.msra.gmra.mxu1 %vm262_vm1, %v1604_v61  ;;  %419 = vmatpush.bf16.msrb.mxu3 %v394_v3 }
  0x9b   : > { %361 = vmatpush.bf16.msrb.mxu1 %v326_v59 }
  0x9c   : > { %v254_v7 = vpop.permute.xlu0 %253 }
  0x9d   : > { %v260_v8 = vsel %vm259_vm2, %v254_v7, %v256_v56  ;;  %1613 = vmatmul.msk.bf16.vlgmr.msrb.gmra.mxu3 %vm262_vm1, %v1971_v4  ;;  %vm1346_vm2 = vcmask 580608  }
  0x9e   : > { %v268_v10 = vsel %vm266_vm0, %v260_v8, 0 }
  0x9f   : > { %283 = vmatpush.bf16.msra.mxu0 %v268_v10  ;;  %v1262_v13 = vld.sshfl [vmem:[#allocation1 + $0x8] sm:$0xff pattern:$0x73625140]  ;;  %v1264_v14 = vld.sshfl [vmem:[#allocation1 + $0x10] sm:$0xff pattern:$0x73625140]  ;;  %v453_v16 = vpop.permute.xlu2 %452 }
  0xa0   : > { %1120 = vrot.lane.b32.xlu1 %v1114_v52, %s1837_s27  ;;  %1268 = vrot.lane.b32.xlu0 %v1262_v13, %s1839_s7  ;;  %v1260_v6 = vld.sshfl [vmem:[#allocation1] sm:$0xff pattern:$0x73625140] }
  0xa1   : > { %1266 = vrot.lane.b32.xlu2 %v1260_v6, %s1839_s7  ;;  %1333 = vst [vmem:[#allocation1] ss:$4 sm:$0xff] %v1329_v12 }
  0xa2   : > { %1605 = vmatmul.msk.bf16.vlgmr.msra.gmra.mxu0 %vm262_vm1, %v1604_v61 }
  0xa3   : > { %348 = vmatpush.bf16.msrb.mxu0 %v324_v9 }
  0xa6   : > { %v379_v15 = vpop.permute.xlu1 %378 }
  0xa7   : > { %432 = vmatpush.bf16.msra.mxu0 %v397_v11  ;;  %v385_v17 = vsel %vm384_vm3, %v379_v15, %v381_v54 }
  0xa8   : > { %v391_v18 = vsel %vm266_vm0, %v385_v17, 0  ;;  %1270 = vrot.lane.b32.xlu1 %v1264_v14, %s1839_s7  ;;  %v1338_v28 = vld.sshfl [vmem:[#allocation1 + $0x10] sm:$0xff pattern:$0x73625140] }
  0xa9   : > { %406 = vmatpush.bf16.msrb.mxu2 %v391_v18  ;;  %1196 = vrot.lane.b32.xlu2 %v1190_v2, %s1838_s4  ;;  %v1336_v29 = vld.sshfl [vmem:[#allocation1 + $0x8] sm:$0xff pattern:$0x73625140]  ;;  %v1334_v52 = vld.sshfl [vmem:[#allocation1] sm:$0xff pattern:$0x73625140] }
  0xaa   : > { %1610 = vmatmul.msk.bf16.vlgmr.msrb.gmra.mxu1 %vm262_vm1, %v1946_v42  ;;  %v603_v22 = vpop.permute.xlu2 %602  ;;  %1342 = vrot.lane.b32.xlu0 %v1336_v29, %s1840_s9  ;;  %s1670_s4 = smul.u32 12, %s213_s29 }
  0xac   : > { %1612 = vmatmul.msk.bf16.vlgmr.msrb.gmra.mxu2 %vm262_vm1, %v1971_v4  ;;  %s215_s15 = scalar_lea.vmem [#allocation3], %s1670_s4 }
  0xad   : > { %s1494_s8 = sshll.u32 %s215_s15, 4  ;;  %s1495_s8 = int_to_ptr.vmem [resolvable:$true] %s1494_s8 }
  0xaf   : > { %v457_v19 = vpop.permute.xlu1 %456 }
  0xb0   : > { %v471_v20 = vsel %vm266_vm0, %v457_v19, 0  ;;  %v455_v21 = vpop.permute.xlu0 %454  ;;  %1344 = vrot.lane.b32.xlu1 %v1338_v28, %s1840_s9  ;;  %v1635_v28 = vld [vmem:[%s2170_s1 + $0x20] sm:$0xf] }
  0xb1   : > { %v459_v23 = vsel %vm458_vm4, %v453_v16, %v455_v21  ;;  %v460_v24 = vsel %vm458_vm4, %v455_v21, %v457_v19  ;;  %506 = vmatpush.bf16.msra.mxu3 %v471_v20  ;;  %1340 = vrot.lane.b32.xlu2 %v1334_v52, %s1840_s9  ;;  %s1496_s9 = sshll.u32 %s1492_s30, 4  ;;  %s1497_s9 = int_to_ptr.hbm [resolvable:$true] %s1496_s9 }
  0xb2   : > { %1609 = vmatmul.msk.bf16.vlgmr.msrb.gmra.mxu0 %vm262_vm1, %v1946_v42  ;;  %v465_v26 = vsel %vm266_vm0, %v459_v23, 0  ;;  %v468_v27 = vsel %vm266_vm0, %v460_v24, 0  ;;  %s1760_s11 = sshra.s32 %s1497_s9, 4  ;;  %s1761_s11 = int_to_ptr.hbm [resolvable:$true] %s1760_s11 }
  0xb3   : > { %480 = vmatpush.bf16.msra.mxu1 %v465_v26  ;;  %493 = vmatpush.bf16.msra.mxu2 %v468_v27  ;;  %v675_v32 = vpop.permute.xlu2 %674  ;;  %s1762_s18 = scalar_lea.hbm %s1761_s11, 12  ;;  %p1767_p1 = scmp.lt.s32.totalorder %s1761_s11, %s2172_s3 }
  0xb4   : > { %1618 = vmatmul.msk.bf16.vlgmr.msra.gmra.mxu3 %vm262_vm1, %v1615_v25  ;;  %p1763_p12 = scmp.ne.s32.totalorder %s1761_s11, %s1762_s18  ;;  %p1768_p2 = scmp.lt.s32.totalorder %s1766_s23, %s1762_s18 }
  0xb6   : > { %p1764_p13 = pnand %p1763_p12, %p1902_p4  ;;  %p1769_p3 = por %p1768_p2, %p1767_p1 }
  0xb8   : > { %v531_v30 = vpop.permute.xlu0 %530  ;;  %p1765_p0 = pneg %p1764_p13 }
  0xb9   : > { %v545_v31 = vsel %vm266_vm0, %v531_v30, 0 }
  0xba   : > { %1616 = vmatmul.msk.bf16.vlgmr.msra.gmra.mxu1 %vm262_vm1, %v1615_v25  ;;  %580 = vmatpush.bf16.msrb.mxu2 %v545_v31  ;;  %p1770_p5 = pnand %p1769_p3, %p1765_p0 }
  0xbb   : > { %v605_v37 = vpop.permute.xlu2 %604 }
  0xbc   : > { %1617 = vmatmul.msk.bf16.vlgmr.msra.gmra.mxu2 %vm262_vm1, %v1615_v25  ;;  %v608_v39 = vsel %vm606_vm5, %v603_v22, %v605_v37  ;;  %v619_v48 = vsel %vm266_vm0, %v605_v37, 0 }
  0xbd   : > { %v616_v43 = vsel %vm266_vm0, %v608_v39, 0 }
  0xc0   : > { %v527_v33 = vpop.permute.xlu0 %526 }
  0xc1   : > { %v601_v34 = vpop.permute.xlu1 %600 }
  0xc2   : > { %v607_v35 = vsel %vm606_vm5, %v601_v34, %v603_v22  ;;  %1614 = vmatmul.msk.bf16.vlgmr.msra.gmra.mxu0 %vm262_vm1, %v1971_v4  ;;  %v1639_v22 = vld [vmem:[%s2170_s1 + $0x24] sm:$0xf]  ;;  %v337_v34 = vpop.f32.mrf.mxu3 }
  0xc3   : > { %v613_v36 = vsel %vm266_vm0, %v607_v35, 0  ;;  %v749_v51 = vpop.permute.xlu2 %748 }
  0xc4   : > { %628 = vmatpush.bf16.msrb.mxu3 %v613_v36 }
  0xc7   : > { %1624 = vmatmul.msk.bf16.vlgmr.msrb.gmra.mxu3 %vm262_vm1, %v1623_v38 }
  0xc9   : > { %v529_v40 = vpop.permute.xlu1 %528 }
  0xca   : > { %v533_v41 = vsel %vm532_vm6, %v527_v33, %v529_v40  ;;  %v534_v42 = vsel %vm532_vm6, %v529_v40, %v531_v30  ;;  %v677_v45 = vpop.permute.xlu0 %676  ;;  %v339_v40 = vpop.f32.mrf.mxu3 }
  0xcb   : > { %v539_v46 = vsel %vm266_vm0, %v533_v41, 0  ;;  %v542_v47 = vsel %vm266_vm0, %v534_v42, 0  ;;  %v681_v49 = vsel %vm680_vm7, %v675_v32, %v677_v45  ;;  %v1663_v40 = vld [vmem:[%s2170_s1 + $0x3c] sm:$0xf] }
  0xcc   : > { %554 = vmatpush.bf16.msrb.mxu0 %v539_v46  ;;  %567 = vmatpush.bf16.msrb.mxu1 %v542_v47  ;;  %v687_v50 = vsel %vm266_vm0, %v681_v49, 0 }
  0xcd   : > { %1622 = vmatmul.msk.bf16.vlgmr.msrb.gmra.mxu2 %vm262_vm1, %v1619_v44 }
  0xce   : > { %702 = vmatpush.bf16.msra.mxu2 %v687_v50  ;;  %v899_v61 = vpop.permute.xlu2 %898  ;;  %v1647_v50 = vld [vmem:[%s2170_s1 + $0x2c] sm:$0xf] }
  0xcf   : > { %1621 = vmatmul.msk.bf16.vlgmr.msrb.gmra.mxu1 %vm262_vm1, %v1619_v44 }
  0xd0   : > { %641 = vmatpush.bf16.msra.mxu0 %v616_v43  ;;  %654 = vmatpush.bf16.msra.mxu1 %v619_v48 }
  0xd1   : > { %v679_v53 = vpop.permute.xlu1 %678 }
  0xd2   : > { %1620 = vmatmul.msk.bf16.vlgmr.msrb.gmra.mxu0 %vm262_vm1, %v1619_v44  ;;  %v682_v54 = vsel %vm680_vm7, %v677_v45, %v679_v53  ;;  %v693_v55 = vsel %vm266_vm0, %v679_v53, 0 }
  0xd3   : > { %v690_v56 = vsel %vm266_vm0, %v682_v54, 0 }
  0xd4   : > { %728 = vmatpush.bf16.msrb.mxu0 %v693_v55  ;;  %715 = vmatpush.bf16.msra.mxu3 %v690_v56  ;;  %v751_v58 = vpop.permute.xlu0 %750 }
  0xd5   : > { %v755_v59 = vsel %vm754_vm8, %v749_v51, %v751_v58 }
  0xd6   : > { %v761_v60 = vsel %vm266_vm0, %v755_v59, 0 }
  0xd7   : > { %1629 = vmatmul.msk.bf16.vlgmr.msra.gmra.mxu3 %vm262_vm1, %v1627_v57  ;;  %776 = vmatpush.bf16.msrb.mxu1 %v761_v60  ;;  %v971_v4 = vpop.permute.xlu2 %970 }
  0xd9   : > { %v753_v62 = vpop.permute.xlu1 %752 }
  0xda   : > { %v767_v63 = vsel %vm266_vm0, %v753_v62, 0  ;;  %v756_v0 = vsel %vm754_vm8, %v751_v58, %v753_v62  ;;  %vm1476_vm8 = vcmask 257024  }
  0xdb   : > { %v764_v1 = vsel %vm266_vm0, %v756_v0, 0  ;;  %802 = vmatpush.bf16.msrb.mxu3 %v767_v63 }
  0xdc   : > { %789 = vmatpush.bf16.msrb.mxu2 %v764_v1 }
  0xdd   : > { %1628 = vmatmul.msk.bf16.vlgmr.msra.gmra.mxu2 %vm262_vm1, %v1627_v57  ;;  %v827_v2 = vpop.permute.xlu0 %826 }
  0xde   : > { %v841_v3 = vsel %vm266_vm0, %v827_v2, 0 }
  0xdf   : > { %1626 = vmatmul.msk.bf16.vlgmr.msra.gmra.mxu1 %vm262_vm1, %v1623_v38  ;;  %v901_v11 = vpop.permute.xlu2 %900 }
  0xe0   : > { %876 = vmatpush.bf16.msra.mxu2 %v841_v3  ;;  %v904_v13 = vsel %vm902_vm9, %v899_v61, %v901_v11  ;;  %v915_v15 = vsel %vm266_vm0, %v901_v11, 0 }
  0xe1   : > { %v912_v20 = vsel %vm266_vm0, %v904_v13, 0 }
  0xe2   : > { %1625 = vmatmul.msk.bf16.vlgmr.msra.gmra.mxu0 %vm262_vm1, %v1623_v38  ;;  %v1643_v38 = vld [vmem:[%s2170_s1 + $0x28] sm:$0xf] }
  0xe5   : > { %v897_v7 = vpop.permute.xlu1 %896  ;;  %v823_v8 = vpop.permute.xlu0 %822 }
  0xe6   : > { %v903_v9 = vsel %vm902_vm9, %v897_v7, %v899_v61  ;;  %v1655_v7 = vld [vmem:[%s2170_s1 + $0x34] sm:$0xf] }
  0xe7   : > { %v909_v10 = vsel %vm266_vm0, %v903_v9, 0  ;;  %1634 = vmatmul.msk.bf16.vlgmr.msrb.gmra.mxu3 %vm262_vm1, %v1631_v5  ;;  %v1045_v27 = vpop.permute.xlu2 %1044 }
  0xe8   : > { %924 = vmatpush.bf16.msra.mxu3 %v909_v10 }
  0xed   : > { %1633 = vmatmul.msk.bf16.vlgmr.msrb.gmra.mxu2 %vm262_vm1, %v1631_v5  ;;  %v825_v12 = vpop.permute.xlu1 %824 }
  0xee   : > { %v830_v14 = vsel %vm828_vm10, %v825_v12, %v827_v2  ;;  %v829_v6 = vsel %vm828_vm10, %v823_v8, %v825_v12  ;;  %v973_v16 = vpop.permute.xlu0 %972 }
  0xef   : > { %1632 = vmatmul.msk.bf16.vlgmr.msrb.gmra.mxu1 %vm262_vm1, %v1631_v5  ;;  %v838_v17 = vsel %vm266_vm0, %v830_v14, 0  ;;  %v835_v18 = vsel %vm266_vm0, %v829_v6, 0  ;;  %v977_v19 = vsel %vm976_vm11, %v971_v4, %v973_v16 }
  0xf0   : > { %863 = vmatpush.bf16.msra.mxu1 %v838_v17  ;;  %850 = vmatpush.bf16.msra.mxu0 %v835_v18  ;;  %v983_v21 = vsel %vm266_vm0, %v977_v19, 0 }
  0xf1   : > { %998 = vmatpush.bf16.msrb.mxu2 %v983_v21 }
  0xf2   : > { %1630 = vmatmul.msk.bf16.vlgmr.msrb.gmra.mxu0 %vm262_vm1, %v1627_v57  ;;  %v1195_v39 = vpop.permute.xlu2 %1194 }
  0xf4   : > { %950 = vmatpush.bf16.msrb.mxu1 %v915_v15  ;;  %937 = vmatpush.bf16.msrb.mxu0 %v912_v20 }
  0xf5   : > { %v975_v23 = vpop.permute.xlu1 %974 }
  0xf6   : > { %v978_v24 = vsel %vm976_vm11, %v973_v16, %v975_v23  ;;  %v989_v36 = vsel %vm266_vm0, %v975_v23, 0  ;;  %v1651_v16 = vld [vmem:[%s2170_s1 + $0x30] sm:$0xf] }
  0xf7   : > { %1640 = vmatmul.msk.bf16.vlgmr.msra.gmra.mxu3 %vm262_vm1, %v1639_v22  ;;  %v986_v25 = vsel %vm266_vm0, %v978_v24, 0 }
  0xf8   : > { %1011 = vmatpush.bf16.msrb.mxu3 %v986_v25  ;;  %v1047_v26 = vpop.permute.xlu0 %1046 }
  0xf9   : > { %v1051_v29 = vsel %vm1050_vm12, %v1045_v27, %v1047_v26  ;;  %v1659_v27 = vld [vmem:[%s2170_s1 + $0x38] sm:$0xf] }
  0xfa   : > { %v1057_v31 = vsel %vm266_vm0, %v1051_v29, 0 }
  0xfb   : > { %v1267_v46 = vpop.permute.xlu2 %1266 }
  0xfd   : > { %1638 = vmatmul.msk.bf16.vlgmr.msra.gmra.mxu2 %vm262_vm1, %v1635_v28  ;;  %v1049_v30 = vpop.permute.xlu1 %1048 }
  0xfe   : > { %v1063_v32 = vsel %vm266_vm0, %v1049_v30, 0  ;;  %v1052_v33 = vsel %vm1050_vm12, %v1047_v26, %v1049_v30 }
  0xff   : > { %1637 = vmatmul.msk.bf16.vlgmr.msra.gmra.mxu1 %vm262_vm1, %v1635_v28  ;;  %v1060_v35 = vsel %vm266_vm0, %v1052_v33, 0  ;;  %1098 = vmatpush.bf16.msra.mxu3 %v1063_v32 }
 0x100   : > { %1072 = vmatpush.bf16.msra.mxu1 %v1057_v31  ;;  %1085 = vmatpush.bf16.msra.mxu2 %v1060_v35 }
 0x101   : > { %v1123_v37 = vpop.permute.xlu0 %1122 }
 0x102   : > { %1636 = vmatmul.msk.bf16.vlgmr.msra.gmra.mxu0 %vm262_vm1, %v1635_v28  ;;  %v1137_v43 = vsel %vm266_vm0, %v1123_v37, 0 }
 0x103   : > { %1024 = vmatpush.bf16.msra.mxu0 %v989_v36  ;;  %v1197_v56 = vpop.permute.xlu2 %1196 }
 0x104   : > { %v1200_v62 = vsel %vm1198_vm13, %v1195_v39, %v1197_v56  ;;  %v1211_v63 = vsel %vm266_vm0, %v1197_v56, 0 }
 0x105   : > { %v1208_v3 = vsel %vm266_vm0, %v1200_v62, 0 }
 0x107   : > { %1645 = vmatmul.msk.bf16.vlgmr.msrb.gmra.mxu3 %vm262_vm1, %v1643_v38 }
 0x109   : > { %v1119_v45 = vpop.permute.xlu0 %1118 }
 0x10a   : > { %v1193_v41 = vpop.permute.xlu1 %1192 }
 0x10b   : > { %v1199_v42 = vsel %vm1198_vm13, %v1193_v41, %v1195_v39  ;;  %v1341_v15 = vpop.permute.xlu2 %1340 }
 0x10c   : > { %v1205_v44 = vsel %vm266_vm0, %v1199_v42, 0 }
 0x10d   : > { %1644 = vmatmul.msk.bf16.vlgmr.msrb.gmra.mxu2 %vm262_vm1, %v1643_v38  ;;  %1220 = vmatpush.bf16.msrb.mxu3 %v1205_v44 }
 0x10e   : > { %1172 = vmatpush.bf16.msrb.mxu2 %v1137_v43 }
 0x10f   : > { %1642 = vmatmul.msk.bf16.vlgmr.msrb.gmra.mxu1 %vm262_vm1, %v1639_v22 }
 0x112   : > { %1641 = vmatmul.msk.bf16.vlgmr.msrb.gmra.mxu0 %vm262_vm1, %v1639_v22  ;;  %v1121_v47 = vpop.permute.xlu1 %1120  ;;  %v1269_v54 = vpop.permute.xlu0 %1268 }
 0x113   : > { %v1126_v48 = vsel %vm1124_vm14, %v1121_v47, %v1123_v37  ;;  %v1125_v49 = vsel %vm1124_vm14, %v1119_v45, %v1121_v47  ;;  %v1273_v55 = vsel %vm1272_vm15, %v1267_v46, %v1269_v54 }
 0x114   : > { %v1134_v51 = vsel %vm266_vm0, %v1126_v48, 0  ;;  %v1131_v52 = vsel %vm266_vm0, %v1125_v49, 0  ;;  %v1279_v58 = vsel %vm266_vm0, %v1273_v55, 0 }
 0x115   : > { %1159 = vmatpush.bf16.msrb.mxu1 %v1134_v51  ;;  %1146 = vmatpush.bf16.msrb.mxu0 %v1131_v52 }
 0x117   : > { %v298_v53 = vpop.f32.mrf.mxu1  ;;  %1650 = vmatmul.msk.bf16.vlgmr.msra.gmra.mxu3 %vm262_vm1, %v1647_v50 }
 0x11a   : > { %v1271_v57 = vpop.permute.xlu1 %1270 }
 0x11b   : > { %v1274_v59 = vsel %vm1272_vm15, %v1269_v54, %v1271_v57  ;;  %v1285_v25 = vsel %vm266_vm0, %v1271_v57, 0 }
 0x11c   : > { %v311_v60 = vpop.f32.mrf.mxu2  ;;  %v1282_v61 = vsel %vm266_vm0, %v1274_v59, 0  ;;  %v1343_v14 = vpop.permute.xlu0 %1342 }
 0x11d   : > { %1649 = vmatmul.msk.bf16.vlgmr.msra.gmra.mxu2 %vm262_vm1, %v1647_v50  ;;  %1307 = vmatpush.bf16.msra.mxu3 %v1282_v61  ;;  %v1347_v17 = vsel %vm1346_vm2, %v1341_v15, %v1343_v14 }
 0x11e   : > { %1294 = vmatpush.bf16.msra.mxu2 %v1279_v58  ;;  %v1353_v19 = vsel %vm266_vm0, %v1347_v17, 0 }
 0x11f   : > { %1648 = vmatmul.msk.bf16.vlgmr.msra.gmra.mxu1 %vm262_vm1, %v1647_v50  ;;  %v285_v0 = vpop.f32.mrf.mxu0  ;;  %v300_v1 = vpop.f32.mrf.mxu1 }
 0x120   : > { %v338_v2 = vadd.f32 %v337_v34, %v285_v0  ;;  %v421_v4 = vpop.f32.mrf.mxu3  ;;  %1246 = vmatpush.bf16.msra.mxu1 %v1211_v63 }
 0x122   : > { %1646 = vmatmul.msk.bf16.vlgmr.msra.gmra.mxu0 %vm262_vm1, %v1643_v38  ;;  %v1345_v8 = vpop.permute.xlu1 %1344 }
 0x123   : > { %1233 = vmatpush.bf16.msra.mxu0 %v1208_v3  ;;  %v1359_v11 = vsel %vm266_vm0, %v1345_v8, 0  ;;  %v1348_v6 = vsel %vm1346_vm2, %v1343_v14, %v1345_v8 }
 0x124   : > { %v313_v5 = vpop.f32.mrf.mxu2  ;;  %v1356_v18 = vsel %vm266_vm0, %v1348_v6, 0  ;;  %vm239_vm0 = vcmask 261120  }
 0x127   : > { %v287_v9 = vpop.f32.mrf.mxu0  ;;  %v363_v10 = vpop.f32.mrf.mxu1  ;;  %1656 = vmatmul.msk.bf16.vlgmr.msrb.gmra.mxu3 %vm262_vm1, %v1655_v7 }
 0x128   : > { %v364_v12 = vadd.f32 %v363_v10, %v311_v60  ;;  %v423_v13 = vpop.f32.mrf.mxu3  ;;  %1394 = vmatpush.bf16.msrb.mxu3 %v1359_v11 }
 0x12d   : > { %1654 = vmatmul.msk.bf16.vlgmr.msrb.gmra.mxu2 %vm262_vm1, %v1651_v16 }
 0x12e   : > { %1381 = vmatpush.bf16.msrb.mxu2 %v1356_v18 }
 0x12f   : > { %1653 = vmatmul.msk.bf16.vlgmr.msrb.gmra.mxu1 %vm262_vm1, %v1651_v16  ;;  %v408_v20 = vpop.f32.mrf.mxu2  ;;  %v350_v21 = vpop.f32.mrf.mxu0 }
 0x130   : > { %v438_v22 = vadd.f32 %v408_v20, %v338_v2  ;;  %v351_v23 = vadd.f32 %v350_v21, %v298_v53  ;;  %v365_v24 = vpop.f32.mrf.mxu1  ;;  %1368 = vmatpush.bf16.msrb.mxu1 %v1353_v19 }
 0x132   : > { %v439_v26 = vadd.f32 %v421_v4, %v351_v23  ;;  %1652 = vmatmul.msk.bf16.vlgmr.msrb.gmra.mxu0 %vm262_vm1, %v1651_v16 }
 0x133   : > { %1320 = vmatpush.bf16.msrb.mxu0 %v1285_v25 }
 0x137   : > { %v410_v28 = vpop.f32.mrf.mxu2  ;;  %v352_v29 = vpop.f32.mrf.mxu0  ;;  %1661 = vmatmul.msk.bf16.vlgmr.msra.gmra.mxu3 %vm262_vm1, %v1659_v27 }
 0x138   : > { %v482_v30 = vpop.f32.mrf.mxu1  ;;  %v508_v31 = vpop.f32.mrf.mxu3 }
 0x139   : > { %v512_v32 = vadd.f32 %v482_v30, %v438_v22 }
 0x13d   : > { %1660 = vmatmul.msk.bf16.vlgmr.msra.gmra.mxu2 %vm262_vm1, %v1659_v27 }
 0x13f   : > { %1658 = vmatmul.msk.bf16.vlgmr.msra.gmra.mxu1 %vm262_vm1, %v1655_v7  ;;  %v495_v33 = vpop.f32.mrf.mxu2  ;;  %v434_v34 = vpop.f32.mrf.mxu0 }
 0x140   : > { %v513_v35 = vadd.f32 %v495_v33, %v439_v26  ;;  %v440_v36 = vadd.f32 %v434_v34, %v364_v12  ;;  %v484_v37 = vpop.f32.mrf.mxu1  ;;  %v510_v38 = vpop.f32.mrf.mxu3 }
 0x142   : > { %v514_v39 = vadd.f32 %v508_v31, %v440_v36  ;;  %1657 = vmatmul.msk.bf16.vlgmr.msra.gmra.mxu0 %vm262_vm1, %v1655_v7 }
 0x147   : > { %v497_v41 = vpop.f32.mrf.mxu2  ;;  %v436_v42 = vpop.f32.mrf.mxu0  ;;  %1666 = vmatmul.msk.bf16.vlgmr.msrb.gmra.mxu3 %vm262_vm1, %v1663_v40 }
 0x14a   : > { %v630_v43 = vpop.f32.mrf.mxu3 }
 0x14c   : > { %v569_v44 = vpop.f32.mrf.mxu1 }
 0x14d   : > { %v587_v45 = vadd.f32 %v569_v44, %v513_v35  ;;  %1665 = vmatmul.msk.bf16.vlgmr.msrb.gmra.mxu2 %vm262_vm1, %v1663_v40 }
 0x14f   : > { %1664 = vmatmul.msk.bf16.vlgmr.msrb.gmra.mxu1 %vm262_vm1, %v1663_v40  ;;  %v556_v46 = vpop.f32.mrf.mxu0 }
 0x150   : > { %v582_v47 = vpop.f32.mrf.mxu2  ;;  %v586_v48 = vadd.f32 %v556_v46, %v512_v32 }
 0x151   : > { %v588_v49 = vadd.f32 %v582_v47, %v514_v39  ;;  %v1841_v47 = vmov 0.0  }
 0x152   : > { %v660_v50 = vadd.f32 %v630_v43, %v586_v48  ;;  %1662 = vmatmul.msk.bf16.vlgmr.msrb.gmra.mxu0 %vm262_vm1, %v1659_v27  ;;  %v632_v51 = vpop.f32.mrf.mxu3  ;;  %240 = vst.msk [vmem:[#allocation2 + $0x10] sm:$0xff] %vm239_vm0, %v1841_v47 }
 0x154   : > { %v571_v52 = vpop.f32.mrf.mxu1 }
 0x157   : > { %v558_v53 = vpop.f32.mrf.mxu0 }
 0x158   : > { %v584_v54 = vpop.f32.mrf.mxu2 }
 0x15a   : > { %v717_v55 = vpop.f32.mrf.mxu3 }
 0x15c   : > { %v656_v56 = vpop.f32.mrf.mxu1 }
 0x15d   : > { %v662_v57 = vadd.f32 %v656_v56, %v588_v49 }
 0x15f   : > { %v643_v58 = vpop.f32.mrf.mxu0 }
 0x160   : > { %v704_v59 = vpop.f32.mrf.mxu2  ;;  %v661_v60 = vadd.f32 %v643_v58, %v587_v45 }
 0x161   : > { %v734_v61 = vadd.f32 %v704_v59, %v660_v50 }
 0x162   : > { %v735_v62 = vadd.f32 %v717_v55, %v661_v60  ;;  %v719_v63 = vpop.f32.mrf.mxu3 }
 0x164   : > { %v658_v0 = vpop.f32.mrf.mxu1 }
 0x167   : > { %v645_v1 = vpop.f32.mrf.mxu0 }
 0x168   : > { %v706_v2 = vpop.f32.mrf.mxu2 }
 0x16a   : > { %v804_v3 = vpop.f32.mrf.mxu3 }
 0x16c   : > { %v778_v4 = vpop.f32.mrf.mxu1 }
 0x16d   : > { %v808_v5 = vadd.f32 %v778_v4, %v734_v61 }
 0x16f   : > { %v730_v7 = vpop.f32.mrf.mxu0 }
 0x170   : > { %v791_v8 = vpop.f32.mrf.mxu2  ;;  %v736_v9 = vadd.f32 %v730_v7, %v662_v57 }
 0x171   : > { %v809_v10 = vadd.f32 %v791_v8, %v735_v62 }
 0x172   : > { %v810_v11 = vadd.f32 %v804_v3, %v736_v9  ;;  %v806_v12 = vpop.f32.mrf.mxu3 }
 0x174   : > { %v780_v13 = vpop.f32.mrf.mxu1 }
 0x177   : > { %v732_v14 = vpop.f32.mrf.mxu0 }
 0x178   : > { %v793_v6 = vpop.f32.mrf.mxu2 }
 0x17a   : > { %v926_v15 = vpop.f32.mrf.mxu3 }
 0x17c   : > { %v865_v16 = vpop.f32.mrf.mxu1 }
 0x17d   : > { %v883_v17 = vadd.f32 %v865_v16, %v809_v10 }
 0x17f   : > { %v852_v18 = vpop.f32.mrf.mxu0 }
 0x180   : > { %v878_v19 = vpop.f32.mrf.mxu2  ;;  %v882_v20 = vadd.f32 %v852_v18, %v808_v5 }
 0x181   : > { %v884_v21 = vadd.f32 %v878_v19, %v810_v11  ;;  %v1405_v19 = vld [vmem:[#allocation2 + $0x10] sm:$0xff] }
 0x182   : > { %v956_v22 = vadd.f32 %v926_v15, %v882_v20  ;;  %v928_v23 = vpop.f32.mrf.mxu3 }
 0x184   : > { %v867_v24 = vpop.f32.mrf.mxu1 }
 0x185   : > { %v1419_v24 = vld [vmem:[%s2171_s2] sm:$0x7] }
 0x187   : > { %v854_v25 = vpop.f32.mrf.mxu0 }
 0x188   : > { %v880_v26 = vpop.f32.mrf.mxu2  ;;  %v1422_v25 = vperm.slane %v1419_v24, 1 }
 0x18a   : > { %v1013_v27 = vpop.f32.mrf.mxu3 }
 0x18c   : > { %v952_v28 = vpop.f32.mrf.mxu1 }
 0x18d   : > { %v958_v60 = vadd.f32 %v952_v28, %v884_v21 }
 0x18f   : > { %v939_v29 = vpop.f32.mrf.mxu0 }
 0x190   : > { %v1000_v30 = vpop.f32.mrf.mxu2  ;;  %v957_v57 = vadd.f32 %v939_v29, %v883_v17 }
 0x191   : > { %v1030_v56 = vadd.f32 %v1000_v30, %v956_v22  ;;  %v1423_v30 = vperm.slane %v1419_v24, 2 }
 0x192   : > { %v1015_v31 = vpop.f32.mrf.mxu3  ;;  %v1031_v62 = vadd.f32 %v1013_v27, %v957_v57  ;;  %v1421_v27 = vperm.slane %v1419_v24, 0 }
 0x194   : > { %v954_v32 = vpop.f32.mrf.mxu1 }
 0x197   : > { %v941_v33 = vpop.f32.mrf.mxu0 }
 0x198   : > { %v1002_v34 = vpop.f32.mrf.mxu2 }
 0x19a   : > { %v1100_v35 = vpop.f32.mrf.mxu3 }
 0x19c   : > { %v1074_v36 = vpop.f32.mrf.mxu1 }
 0x19d   : > { %v1104_v59 = vadd.f32 %v1074_v36, %v1030_v56 }
 0x19f   : > { %v1026_v37 = vpop.f32.mrf.mxu0 }
 0x1a0   : > { %v1087_v38 = vpop.f32.mrf.mxu2  ;;  %v1032_v0 = vadd.f32 %v1026_v37, %v958_v60 }
 0x1a1   : > { %v1105_v1 = vadd.f32 %v1087_v38, %v1031_v62 }
 0x1a2   : > { %v1102_v39 = vpop.f32.mrf.mxu3  ;;  %v1106_v7 = vadd.f32 %v1100_v35, %v1032_v0 }
 0x1a4   : > { %v1076_v40 = vpop.f32.mrf.mxu1 }
 0x1a7   : > { %v1028_v41 = vpop.f32.mrf.mxu0 }
 0x1a8   : > { %v1089_v42 = vpop.f32.mrf.mxu2 }
 0x1aa   : > { %v1222_v43 = vpop.f32.mrf.mxu3 }
 0x1ac   : > { %v1161_v44 = vpop.f32.mrf.mxu1 }
 0x1ad   : > { %v1179_v4 = vadd.f32 %v1161_v44, %v1105_v1 }
 0x1af   : > { %v1148_v45 = vpop.f32.mrf.mxu0 }
 0x1b0   : > { %v1174_v46 = vpop.f32.mrf.mxu2  ;;  %v1178_v63 = vadd.f32 %v1148_v45, %v1104_v59 }
 0x1b1   : > { %v1180_v11 = vadd.f32 %v1174_v46, %v1106_v7 }
 0x1b2   : > { %v1224_v48 = vpop.f32.mrf.mxu3  ;;  %v1252_v5 = vadd.f32 %v1222_v43, %v1178_v63 }
 0x1b4   : > { %v1163_v49 = vpop.f32.mrf.mxu1 }
 0x1b7   : > { %v1150_v50 = vpop.f32.mrf.mxu0 }
 0x1b8   : > { %v1176_v51 = vpop.f32.mrf.mxu2 }
 0x1ba   : > { %v1309_v52 = vpop.f32.mrf.mxu3 }
 0x1bc   : > { %v1248_v53 = vpop.f32.mrf.mxu1 }
 0x1bd   : > { %v1254_v14 = vadd.f32 %v1248_v53, %v1180_v11 }
 0x1bf   : > { %v1235_v54 = vpop.f32.mrf.mxu0 }
 0x1c0   : > { %v1296_v55 = vpop.f32.mrf.mxu2  ;;  %v1253_v10 = vadd.f32 %v1235_v54, %v1179_v4 }
 0x1c1   : > { %v1326_v9 = vadd.f32 %v1296_v55, %v1252_v5 }
 0x1c2   : > { %v1311_v58 = vpop.f32.mrf.mxu3  ;;  %v1327_v6 = vadd.f32 %v1309_v52, %v1253_v10 }
 0x1c4   : > { %v1250_v61 = vpop.f32.mrf.mxu1 }
 0x1c7   : > { %v1237_v2 = vpop.f32.mrf.mxu0 }
 0x1c8   : > { %v1298_v3 = vpop.f32.mrf.mxu2 }
 0x1ca   : > { %v1396_v8 = vpop.f32.mrf.mxu3 }
 0x1cc   : > { %v1370_v12 = vpop.f32.mrf.mxu1 }
 0x1cd   : > { %v1400_v13 = vadd.f32 %v1370_v12, %v1326_v9 }
 0x1cf   : > { %v1322_v15 = vpop.f32.mrf.mxu0  ;;  %v1427_v31 = vmul.f32 %v1421_v27, %v1400_v13 }
 0x1d0   : > { %v1383_v16 = vpop.f32.mrf.mxu2  ;;  %v1328_v17 = vadd.f32 %v1322_v15, %v1254_v14 }
 0x1d1   : > { %v1401_v18 = vadd.f32 %v1383_v16, %v1327_v6  ;;  %v1435_v36 = vmul.f32 %v1427_v31, %v1427_v31 }
 0x1d2   : > { %v1402_v20 = vadd.f32 %v1396_v8, %v1328_v17  ;;  %v1398_v21 = vpop.f32.mrf.mxu3 }
 0x1d3   : > { %v1428_v29 = vmul.f32 %v1422_v25, %v1401_v18 }
 0x1d4   : > { %v1408_v22 = vadd.f32 %v1405_v19, %v1402_v20  ;;  %v1372_v23 = vpop.f32.mrf.mxu1 }
 0x1d5   : > { %v1436_v33 = vmul.f32 %v1428_v29, %v1428_v29  ;;  %v1430_v35 = vadd.f32 %v1428_v29, %v1427_v31 }
 0x1d6   : > { %1412 = vst.msk [vmem:[#allocation2 + $0x10] sm:$0xff] %vm239_vm0, %v1408_v22 }
 0x1d7   : > { %v1324_v26 = vpop.f32.mrf.mxu0  ;;  %v1438_v40 = vadd.f32 %v1436_v33, %v1435_v36 }
 0x1d8   : > { %v1385_v28 = vpop.f32.mrf.mxu2 }
 0x1dd   : > { %v1418_v32 = vld [vmem:[#allocation2 + $0x10] sm:$0xff] }
 0x1de   : > { %v1429_v34 = vmul.f32 %v1423_v30, %v1418_v32 }
 0x1e0   : > { %v1431_v37 = vsel %vm239_vm0, %v1429_v34, 0.0  ;;  %v1437_v38 = vmul.f32 %v1429_v34, %v1429_v34 }
 0x1e1   : > { %v1432_v39 = vadd.f32 %v1431_v37, %v1430_v35 }
 0x1e2   : > { %v1439_v41 = vsel %vm239_vm0, %v1437_v38, 0.0 }
 0x1e3   : > { %1433 = vadd.xlane.f32.xlu0 %v1432_v39  ;;  %v1440_v42 = vadd.f32 %v1439_v41, %v1438_v40 }
 0x1e5   : > { %1441 = vadd.xlane.f32.xlu1 %v1440_v42 }
 0x256   : > { %v1434_v43 = vpop.xlane.xlu0 %1433 }
 0x257   : > { %v1443_v44 = vmul.f32 0.0044444446, %v1434_v43 }
 0x258   : > { %v1442_v45 = vpop.xlane.xlu1 %1441 }
 0x259   : > { %v1444_v46 = vmul.f32 0.0044444446, %v1442_v45  ;;  %v1445_v47 = vmul.f32 %v1443_v44, %v1443_v44  ;;  %v1447_v56 = vsub.f32 %v1400_v13, %v1443_v44  ;;  %v1448_v57 = vsub.f32 %v1401_v18, %v1443_v44 }
 0x25a   : > { %v1449_v58 = vsub.f32 %v1418_v32, %v1443_v44 }
 0x25b   : > { %v1446_v48 = vsub.f32 %v1444_v46, %v1445_v47 }
 0x25d   : > { %v1450_v49 = vadd.f32 1e-05, %v1446_v48 }
 0x25f   : > { %1744 = vrsqrt.f32 %v1450_v49  ;;  %vm1457_vm3 = vweird.f32 %v1450_v49 }
 0x265   : > { %v1745_v50 = vpop.eup %1744 }
 0x266   : > { %v1452_v51 = vmul.f32 %v1745_v50, %v1450_v49  ;;  %vm1458_vm1 = vweird.f32 %v1745_v50 }
 0x267   : > { %vm1459_vm4 = vmor %vm1457_vm3, %vm1458_vm1 }
 0x268   : > { %v1453_v52 = vmul.f32 %v1745_v50, %v1452_v51 }
 0x26a   : > { %v1454_v53 = vmul.f32 0.5, %v1453_v52 }
 0x26c   : > { %v1455_v54 = vsub.f32 1.5, %v1454_v53 }
 0x26e   : > { %v1456_v55 = vmul.f32 %v1745_v50, %v1455_v54 }
 0x270   : > { %v1460_v59 = vsel %vm1459_vm4, %v1745_v50, %v1456_v55 }
 0x271   : > { %v1461_v60 = vmul.f32 %v1460_v59, %v1447_v56  ;;  %v1462_v61 = vmul.f32 %v1460_v59, %v1448_v57  ;;  %v1463_v62 = vmul.f32 %v1460_v59, %v1449_v58 }
 0x273   : > { %vm1464_vm5 = vcmp.ge.f32.partialorder %v1461_v60, 0.0  ;;  %vm1465_vm6 = vcmp.ge.f32.partialorder %v1462_v61, 0.0  ;;  %vm1466_vm7 = vcmp.ge.f32.partialorder %v1463_v62, 0.0  ;;  %v1467_v63 = vmul.f32 0.2, %v1461_v60 }
 0x274   : > { %v1468_v0 = vmul.f32 0.2, %v1462_v61  ;;  %v1469_v1 = vmul.f32 0.2, %v1463_v62 }
 0x275   : > { %v1470_v2 = vsel %vm1464_vm5, %v1461_v60, %v1467_v63 }
 0x276   : > { %v1471_v3 = vsel %vm1465_vm6, %v1462_v61, %v1468_v0  ;;  %v1472_v4 = vsel %vm1466_vm7, %v1463_v62, %v1469_v1 }
 0x277   : > { %v1473_v5 = vpack.c.bf16 %v1471_v3, %v1470_v2  ;;  %v1474_v7 = vpack.c.bf16 %v1472_v4, %v1472_v4 }
 0x279   : > { %1475 = vst [vmem:[%s215_s15] sm:$0xff] %v1473_v5 }
 0x27a   : > { %1477 = vst.msk [vmem:[%s215_s15 + $0x8] sm:$0xf] %vm1476_vm8, %v1474_v7 }
 0x27b   : > { %1773 = shalt.err (!%p1770_p5)
}
 0x27c   : > { %1673 = dma.vmem_to_hbm [thread:$0]  (%p1902_p4), %s1495_s8, 192, %s1497_s9, %s1479_s10  }
 0x27d PF: > { %p1679_p6 = scmp.ge.s32.totalorder %s1824_s17, 2  ;;  %s1508_s28 = sand.u32 1, %s1804_s12  }
 0x27e   : > { %s1509_s29 = scalar_lea.sflag [#allocation4], %s1508_s28 }
 0x27f   : > { %p1676_p7 = pnand %p1679_p6, %p1909_p8 }
 0x281   : > { %p1677_p9 = pneg %p1676_p7 }
 0x283   : > { %1799 = dma.done.wait (%p1677_p9), %s1509_s29, 192  }
 0x284   : > { %1801 = vsyncadd (%p1677_p9), %s1509_s29, 4294967104  ;;  %s16_s17 = sadd.s32 1, %s1824_s17   ;;  %s2175_s12 = smov %s1808_s13 }
 0x285   : > { %p13_p10 = scmp.ge.s32.totalorder %s16_s17, 4   ;;  %s2176_s13 = smov %s1812_s14 }
 0x286   : > { %s2177_s14 = smov %s1915_s25  ;;  %s2178_s15 = smov %s1820_s16 }
 0x287   : > { %s2179_s16 = smov %s2181_s20  ;;  %15 = sbr.rel (!%p13_p10) target bundleno = 4 (0x4), region = 93 }
 0x28c   :  { %1515 = vsyncpa [#allocation4], 1 }
 0x28d   :  { %1517 = vsyncpa [#allocation4 + $0x1], 1 }

</bundles_post_ra>
